<compile_context>
chip_gen: v7x
topology: tpu7x:2x2x1
jax: 0.10.0
libtpu: 0.0.40
codegen_flags: <defaults>
</compile_context>

<pallas_src>
import numpy as np
import jax
import jax.numpy as jnp
from jax import lax
from jax.experimental import pallas as pl
from jax.experimental.pallas import tpu as pltpu

THETA = 0.7            # module hyper-parameter (PrunedCaps has no weights)
_EPS = 1e-8
_VMEM_BUDGET_BYTES = 20 << 20        # buffers + intermediates; safe on v7x (64 MiB)
_VMEM_LIMIT_BYTES = 32 * 1024 * 1024


# ----------------------------- Pallas kernel --------------------------------

def _fused_prune_compact_kernel(u_ref, out_ref, cnt_ref):
    # Block shapes:
    #   u_ref   (Bb, n, D)  capsules in ORIGINAL order
    #   out_ref (Bb, n, D)  kept capsules first (ascending norm), zero tail
    #   cnt_ref (Bb, 1, 1)  number of kept capsules per batch element
    x = u_ref[...].astype(jnp.float32)                        # (Bb, n, D)
    n = x.shape[1]
    hi = lax.Precision.HIGHEST

    # Batched Gram on the MXU; contraction over the last dim of both operands
    # (no explicit transpose -> no XLU relayout copy).
    # TODO(synk): if n grows and compute ever becomes visible, group batches so
    # the Gram runs at g*n ~= MXU width, or move the (n,n) mask math to a
    # batch-in-lanes layout; at these shapes the kernel is HBM-bound.
    g = jnp.einsum("bid,bjd->bij", x, x,
                   preferred_element_type=jnp.float32, precision=hi)  # (Bb,n,n)

    # Norms straight from the VPU (independent of MXU rounding).
    nrm = jnp.sqrt(jnp.sum(x * x, axis=-1))                   # (Bb, n)

    row = lax.broadcasted_iota(jnp.int32, (n, n), 0)          # i / dest index
    col = lax.broadcasted_iota(jnp.int32, (n, n), 1)          # j index
    nrm_i = nrm[:, :, None]                                   # (Bb, n, 1)
    nrm_j = nrm[:, None, :]                                   # (Bb, 1, n)

    # "j comes strictly after i" under a stable ascending-norm sort.
    later = (nrm_j > nrm_i) | ((nrm_j == nrm_i) & (col[None] > row[None]))
    # cos(i,j) > theta with the torch 1e-8 epsilon, without any division:
    #   g / ((|xi|+eps)(|xj|+eps)) > theta  <=>  g > theta*(|xi|+eps)*(|xj|+eps)
    thresh = THETA * (nrm_i + _EPS) * (nrm_j + _EPS)
    pruned = jnp.any(later & (g > thresh), axis=2)            # (Bb, n)
    keep = ~pruned

    # Destination row of capsule i = its stable rank under key (keep?nrm:+inf):
    # kept capsules land first in ascending-norm order, pruned ones at the end.
    key = jnp.where(keep, nrm, jnp.inf)
    key_i = key[:, :, None]
    key_j = key[:, None, :]
    before = (key_j < key_i) | ((key_j == key_i) & (col[None] < row[None]))
    dest = jnp.sum(before.astype(jnp.int32), axis=2)          # (Bb, n)

    # P[b, r, i] = 1 iff kept capsule i lands in output row r.
    P = jnp.where((dest[:, None, :] == row[None, :, :]) & keep[:, None, :],
                  1.0, 0.0).astype(jnp.float32)               # (Bb, n, n)

    # Compaction as a permutation matmul on the MXU; pruned rows become the
    # zero tail (== torch's zero padding).
    out = jnp.einsum("bri,bid->brd", P, x,
                     preferred_element_type=jnp.float32, precision=hi)
    out_ref[...] = out.astype(out_ref.dtype)
    cnt_ref[...] = jnp.sum(keep.astype(jnp.float32), axis=1)[:, None, None]


# ------------------------------ wrappers -------------------------------------

def _tc_per_device():
    """TensorCores sharing one device's grid ('megacore' parts: v4, v7x)."""
    try:
        kind = jax.devices()[0].device_kind.lower()
    except Exception:
        return 1
    if "v4" in kind or "v7" in kind or "7x" in kind:
        return 2
    return 1


def _pick_bblk(B, n, D, itemsize):
    """Batch elements per grid step.
       * divides B exactly (no jnp.pad pass over the slab)
       * fits the VMEM budget INCLUDING intermediates: 2x double-buffered input,
         2x double-buffered output, f32 cast + f32 result, (n,n) Gram/masks
       * on 2-TensorCore parts prefer an even number of grid steps so both
         cores get equal work; single-TC v5e/v6e just take the biggest block.
    """
    per_b = n * D * (2 * itemsize + 16) + 32 * n * n          # bytes / batch elem
    cap = max(1, min(_VMEM_BUDGET_BYTES // per_b, 1024, B))
    divisors = [d for d in range(1, cap + 1) if B % d == 0]
    tc = _tc_per_device()
    if tc > 1 and B >= tc:
        balanced = [d for d in divisors if (B // d) % tc == 0]
        # take the core-balanced split unless it costs >4x smaller blocks
        if balanced and balanced[-1] * 4 >= divisors[-1]:
            return balanced[-1]
    return divisors[-1]


def fused_prune_compact(u_flat):
    """u_flat (B, n, D) -> (compacted (B, n, D) in input dtype, counts (B,) f32)."""
    B, n, D = u_flat.shape
    bblk = _pick_bblk(B, n, D, jnp.dtype(u_flat.dtype).itemsize)
    n_steps = B // bblk

    compacted, counts = pl.pallas_call(
        _fused_prune_compact_kernel,
        out_shape=(jax.ShapeDtypeStruct((B, n, D), u_flat.dtype),
                   jax.ShapeDtypeStruct((B, 1, 1), jnp.float32)),
        grid=(n_steps,),
        in_specs=[pl.BlockSpec((bblk, n, D), lambda b: (b, 0, 0))],
        out_specs=(pl.BlockSpec((bblk, n, D), lambda b: (b, 0, 0)),
                   pl.BlockSpec((bblk, 1, 1), lambda b: (b, 0, 0))),
        compiler_params=pltpu.CompilerParams(
            dimension_semantics=("parallel",),
            vmem_limit_bytes=_VMEM_LIMIT_BYTES),
    )(u_flat)
    return compacted, counts[:, 0, 0]


@jax.jit
def _device_forward(u):
    """Everything except the data-dependent final width stays on device."""
    B, n, d, H, W = u.shape
    u_flat = u.reshape(B, n, d * H * W)                       # contiguous view
    compacted, counts = fused_prune_compact(u_flat)           # one read + one write
    n_prime_max = jnp.max(counts).astype(jnp.int32)
    return compacted, n_prime_max


def pruned_caps_forward(u):
    """u: (B, n, d, H, W) -> (B, n_prime, d, W, H), torch PrunedCaps semantics."""
    B, n, d, H, W = u.shape
    compacted, n_prime_max = _device_forward(u)
    # TODO(synk): n_prime is data-dependent, so ONE scalar device->host sync is
    # unavoidable to produce the torch-shaped output (mirrors `.item()`).
    # Latency-sensitive callers should consume _device_forward's full-width
    # tensor + device scalar instead and slice lazily downstream.
    n_prime = int(n_prime_max)
    # torch does .view(B, n_prime, d, W, H) — a reinterpretation of the flat
    # d*H*W data; the W/H swap is reproduced verbatim.
    return compacted[:, :n_prime].reshape(B, n_prime, d, W, H)


# ------------------------- numpy reference (torch semantics) ----------------

def _reference_forward(u_np, theta=THETA):
    B, n, d, H, W = u_np.shape
    u_flat = u_np.reshape(B, n, -1)
    l2 = np.linalg.norm(u_flat, axis=-1)                      # (B, n)
    idx = np.argsort(l2, axis=1, kind="stable")
    u_ordered = np.take_along_axis(u_flat, idx[..., None], axis=1)
    sn = np.take_along_axis(l2, idx, axis=1)
    u_norm = u_ordered / (sn[..., None] + 1e-8)
    cos = np.einsum("bid,bjd->bij", u_norm, u_norm)
    mask = np.ones((B, n), dtype=bool)
    for i in range(n):
        later = np.arange(n) > i
        cur = cos[:, i, later]
        prune = (cur > theta).any(axis=1) if later.any() else np.zeros(B, bool)
        mask[:, i] &= ~prune
    n_prime = int(mask.sum(axis=1).max())
    slabs = []
    for b in range(B):
        rows = u_ordered[b][mask[b]]
        if rows.shape[0] < n_prime:
            rows = np.concatenate(
                [rows, np.zeros((n_prime - rows.shape[0], rows.shape[1]), rows.dtype)], 0)
        slabs.append(rows)
    return np.stack(slabs, 0).reshape(B, n_prime, d, W, H)


# ---------------------------------- main -------------------------------------

if __name__ == "__main__":
    B, n, d, H, W = 2, 8, 4, 8, 8
    key = jax.random.PRNGKey(0)
    u = jax.random.normal(key, (B, n, d, H, W), dtype=jnp.float32)
    # make a couple of capsules highly correlated so the pruning path triggers
    k2 = jax.random.normal(jax.random.PRNGKey(1), (B, d, H, W), dtype=jnp.float32)
    u = u.at[:, 1].set(0.5 * u[:, 6] + 0.01 * k2)
    u = u.at[:, 2].set(1.3 * u[:, 5] + 0.01 * k2)

    out = pruned_caps_forward(u)
    out = jax.block_until_ready(out)

    ref = _reference_forward(np.asarray(u))
    assert out.shape == ref.shape, (out.shape, ref.shape)
    np.testing.assert_allclose(np.asarray(out), ref, rtol=1e-5, atol=1e-5)
    print("KERNEL_OK")
</pallas_src>

<mosaic_0001>
module attributes {stable_mosaic.version = 11 : i64} {
  func.func @_fused_prune_compact_kernel(%arg0: i32, %arg1: memref<2x8x256xf32, #tpu.memory_space<vmem>>, %arg2: memref<2x8x256xf32, #tpu.memory_space<vmem>>, %arg3: memref<2x1x1xf32, #tpu.memory_space<vmem>>) attributes {dimension_semantics = [#tpu.dimension_semantics<parallel>], iteration_bounds = array<i64: 1>, scalar_prefetch = 0 : i64, scratch_operands = 0 : i64, tpu.core_type = #tpu.core_type<tc>, window_params = [{transform_indices = @transform_0, window_bounds = array<i64: 2, 8, 256>}, {transform_indices = @transform_1, window_bounds = array<i64: 2, 8, 256>}, {transform_indices = @transform_2, window_bounds = array<i64: 2, 1, 1>}]} {
    %c0 = arith.constant 0 : index
    %c0_0 = arith.constant 0 : index
    %c0_1 = arith.constant 0 : index
    %0 = vector.load %arg1[%c0, %c0_0, %c0_1] : memref<2x8x256xf32, #tpu.memory_space<vmem>>, vector<2x8x256xf32>
    "tpu.trace_start"() <{level = 10 : i32, message = "bid,bjd->bij"}> : () -> ()
    %cst = arith.constant dense<0.000000e+00> : vector<2x8x8xf32>
    %1 = tpu.matmul %0, %0, %cst {dimension_numbers = #tpu.dot_dimension_numbers<[2], [2], [1], [1], [0, 0, 0, 1, 1, 1], [0], [0]>, precision = #tpu.contract_precision<fp32>} : vector<2x8x256xf32>, vector<2x8x256xf32>, vector<2x8x8xf32> -> vector<2x8x8xf32>
    "tpu.trace_stop"() : () -> ()
    %2 = arith.mulf %0, %0 : vector<2x8x256xf32>
    %cst_2 = arith.constant dense<0.000000e+00> : vector<2x8xf32>
    %3 = vector.multi_reduction <add>, %2, %cst_2 [2] : vector<2x8x256xf32> to vector<2x8xf32>
    %4 = math.sqrt %3 : vector<2x8xf32>
    %5 = tpu.iota {dimensions = array<i32: 0>} : vector<8x8xi32>
    %6 = tpu.iota {dimensions = array<i32: 1>} : vector<8x8xi32>
    %7 = vector.shape_cast %4 : vector<2x8xf32> to vector<2x8x1xf32>
    %8 = vector.shape_cast %4 : vector<2x8xf32> to vector<2x1x8xf32>
    %9 = vector.broadcast %8 : vector<2x1x8xf32> to vector<2x8x8xf32>
    %10 = vector.broadcast %7 : vector<2x8x1xf32> to vector<2x8x8xf32>
    %11 = arith.cmpf ogt, %9, %10 : vector<2x8x8xf32>
    %12 = vector.broadcast %8 : vector<2x1x8xf32> to vector<2x8x8xf32>
    %13 = vector.broadcast %7 : vector<2x8x1xf32> to vector<2x8x8xf32>
    %14 = arith.cmpf oeq, %12, %13 : vector<2x8x8xf32>
    %15 = vector.shape_cast %6 : vector<8x8xi32> to vector<1x8x8xi32>
    %16 = vector.shape_cast %5 : vector<8x8xi32> to vector<1x8x8xi32>
    %17 = arith.cmpi sgt, %15, %16 : vector<1x8x8xi32>
    %18 = vector.broadcast %17 : vector<1x8x8xi1> to vector<2x8x8xi1>
    %19 = arith.andi %14, %18 : vector<2x8x8xi1>
    %20 = arith.ori %11, %19 : vector<2x8x8xi1>
    %cst_3 = arith.constant 9.99999993E-9 : f32
    %21 = vector.broadcast %cst_3 : f32 to vector<2x8x1xf32>
    %22 = arith.addf %7, %21 : vector<2x8x1xf32>
    %cst_4 = arith.constant 0.699999988 : f32
    %23 = vector.broadcast %cst_4 : f32 to vector<2x8x1xf32>
    %24 = arith.mulf %23, %22 : vector<2x8x1xf32>
    %cst_5 = arith.constant 9.99999993E-9 : f32
    %25 = vector.broadcast %cst_5 : f32 to vector<2x1x8xf32>
    %26 = arith.addf %8, %25 : vector<2x1x8xf32>
    %27 = vector.broadcast %24 : vector<2x8x1xf32> to vector<2x8x8xf32>
    %28 = vector.broadcast %26 : vector<2x1x8xf32> to vector<2x8x8xf32>
    %29 = arith.mulf %27, %28 : vector<2x8x8xf32>
    %30 = arith.cmpf ogt, %1, %29 : vector<2x8x8xf32>
    %31 = arith.andi %20, %30 : vector<2x8x8xi1>
    %cst_6 = arith.constant 1.000000e+00 : f32
    %cst_7 = arith.constant 0.000000e+00 : f32
    %32 = vector.broadcast %cst_6 : f32 to vector<2x8x8xf32>
    %33 = vector.broadcast %cst_7 : f32 to vector<2x8x8xf32>
    %34 = arith.select %31, %32, %33 : vector<2x8x8xi1>, vector<2x8x8xf32>
    %cst_8 = arith.constant dense<0xFF800000> : vector<2x8xf32>
    %35 = vector.multi_reduction <maximumf>, %34, %cst_8 [2] : vector<2x8x8xf32> to vector<2x8xf32>
    %cst_9 = arith.constant 0.000000e+00 : f32
    %36 = vector.broadcast %cst_9 : f32 to vector<2x8xf32>
    %37 = arith.cmpf ogt, %35, %36 : vector<2x8xf32>
    %cst_10 = arith.constant dense<true> : vector<2x8xi1>
    %38 = arith.xori %37, %cst_10 : vector<2x8xi1>
    %cst_11 = arith.constant 0x7F800000 : f32
    %39 = vector.broadcast %cst_11 : f32 to vector<2x8xf32>
    %40 = arith.select %38, %4, %39 : vector<2x8xi1>, vector<2x8xf32>
    %41 = vector.shape_cast %40 : vector<2x8xf32> to vector<2x8x1xf32>
    %42 = vector.shape_cast %40 : vector<2x8xf32> to vector<2x1x8xf32>
    %43 = vector.broadcast %42 : vector<2x1x8xf32> to vector<2x8x8xf32>
    %44 = vector.broadcast %41 : vector<2x8x1xf32> to vector<2x8x8xf32>
    %45 = arith.cmpf olt, %43, %44 : vector<2x8x8xf32>
    %46 = vector.broadcast %42 : vector<2x1x8xf32> to vector<2x8x8xf32>
    %47 = vector.broadcast %41 : vector<2x8x1xf32> to vector<2x8x8xf32>
    %48 = arith.cmpf oeq, %46, %47 : vector<2x8x8xf32>
    %49 = vector.shape_cast %6 : vector<8x8xi32> to vector<1x8x8xi32>
    %50 = vector.shape_cast %5 : vector<8x8xi32> to vector<1x8x8xi32>
    %51 = arith.cmpi slt, %49, %50 : vector<1x8x8xi32>
    %52 = vector.broadcast %51 : vector<1x8x8xi1> to vector<2x8x8xi1>
    %53 = arith.andi %48, %52 : vector<2x8x8xi1>
    %54 = arith.ori %45, %53 : vector<2x8x8xi1>
    %55 = arith.extui %54 : vector<2x8x8xi1> to vector<2x8x8xi32>
    %cst_12 = arith.constant dense<0> : vector<2x8xi32>
    %56 = vector.multi_reduction <add>, %55, %cst_12 [2] : vector<2x8x8xi32> to vector<2x8xi32>
    %57 = vector.shape_cast %56 : vector<2x8xi32> to vector<2x1x8xi32>
    %58 = vector.shape_cast %5 : vector<8x8xi32> to vector<1x8x8xi32>
    %59 = vector.broadcast %57 : vector<2x1x8xi32> to vector<2x8x8xi32>
    %60 = vector.broadcast %58 : vector<1x8x8xi32> to vector<2x8x8xi32>
    %61 = arith.cmpi eq, %59, %60 : vector<2x8x8xi32>
    %62 = vector.shape_cast %38 : vector<2x8xi1> to vector<2x1x8xi1>
    %63 = vector.broadcast %62 : vector<2x1x8xi1> to vector<2x8x8xi1>
    %64 = arith.andi %61, %63 : vector<2x8x8xi1>
    %cst_13 = arith.constant 1.000000e+00 : f32
    %cst_14 = arith.constant 0.000000e+00 : f32
    %65 = vector.broadcast %cst_13 : f32 to vector<2x8x8xf32>
    %66 = vector.broadcast %cst_14 : f32 to vector<2x8x8xf32>
    %67 = arith.select %64, %65, %66 : vector<2x8x8xi1>, vector<2x8x8xf32>
    "tpu.trace_start"() <{level = 10 : i32, message = "bri,bid->brd"}> : () -> ()
    %cst_15 = arith.constant dense<0.000000e+00> : vector<2x8x256xf32>
    %68 = tpu.matmul %67, %0, %cst_15 {dimension_numbers = #tpu.dot_dimension_numbers<[2], [1], [1], [2], [0, 0, 0, 1, 1, 2], [0], [0]>, precision = #tpu.contract_precision<fp32>} : vector<2x8x8xf32>, vector<2x8x256xf32>, vector<2x8x256xf32> -> vector<2x8x256xf32>
    "tpu.trace_stop"() : () -> ()
    %c0_16 = arith.constant 0 : index
    %c0_17 = arith.constant 0 : index
    %c0_18 = arith.constant 0 : index
    %69 = vector.load %arg2[%c0_16, %c0_17, %c0_18] : memref<2x8x256xf32, #tpu.memory_space<vmem>>, vector<2x8x256xf32>
    tpu.vector_store %arg2[%c0_16, %c0_17, %c0_18], %68 {strides = array<i32>} : memref<2x8x256xf32, #tpu.memory_space<vmem>>, vector<2x8x256xf32>,
    %70 = arith.extui %38 : vector<2x8xi1> to vector<2x8xi32>
    %71 = arith.sitofp %70 : vector<2x8xi32> to vector<2x8xf32>
    %cst_19 = arith.constant dense<0.000000e+00> : vector<2xf32>
    %72 = vector.multi_reduction <add>, %71, %cst_19 [1] : vector<2x8xf32> to vector<2xf32>
    %73 = vector.shape_cast %72 : vector<2xf32> to vector<2x1x1xf32>
    %c0_20 = arith.constant 0 : index
    %c0_21 = arith.constant 0 : index
    %c0_22 = arith.constant 0 : index
    %74 = vector.load %arg3[%c0_20, %c0_21, %c0_22] : memref<2x1x1xf32, #tpu.memory_space<vmem>>, vector<2x1x1xf32>
    tpu.vector_store %arg3[%c0_20, %c0_21, %c0_22], %73 {strides = array<i32>} : memref<2x1x1xf32, #tpu.memory_space<vmem>>, vector<2x1x1xf32>,
    return
  }
  func.func @transform_0(%arg0: i32) -> (i32, i32, i32) {
    %c0_i32 = arith.constant 0 : i32
    %c0_i32_0 = arith.constant 0 : i32
    %c0_i32_1 = arith.constant 0 : i32
    return %arg0, %c0_i32, %c0_i32_0 : i32, i32, i32
  }
  func.func @transform_1(%arg0: i32) -> (i32, i32, i32) {
    %c0_i32 = arith.constant 0 : i32
    %c0_i32_0 = arith.constant 0 : i32
    %c0_i32_1 = arith.constant 0 : i32
    return %arg0, %c0_i32, %c0_i32_0 : i32, i32, i32
  }
  func.func @transform_2(%arg0: i32) -> (i32, i32, i32) {
    %c0_i32 = arith.constant 0 : i32
    %c0_i32_0 = arith.constant 0 : i32
    %c0_i32_1 = arith.constant 0 : i32
    return %arg0, %c0_i32, %c0_i32_0 : i32, i32, i32
  }
}

</mosaic_0001>

<bundles_post_ra>
// kernel: _device_forward.1
= control target key start
LH: loop header
LB: loop body
LE: loop exit
PB: predicated region body
PF: predicated region fallthrough
CT: control target
= control target key end

     0   :  { %v983_v3 = vlaneseq  ;;  %v3315_v9 = vmov 0   ;;  %s4215_s0 = inlined_call_operand.vmem [shape: f32[2,8,256], index: 0, kind: input, shape index: {}]   ;;  %s4216_s1 = inlined_call_operand.hbm [shape: f32[2,8,256], index: 1, kind: output, shape index: {0}]   ;;  %s4217_s2 = inlined_call_operand.vmem [shape: f32[2,1,1], index: 2, kind: output, shape index: {1}]  }
   0x1   :  { %v12_v0 = vld [vmem:[%s4215_s0 + $0x8] sm:$0xff]  ;;  %v11_v1 = vld [vmem:[%s4215_s0] sm:$0xff]  ;;  %v14_v2 = vld [vmem:[%s4215_s0 + $0x18] sm:$0xff]  ;;  %3205 = vset.pattern.permute.xlu1 %v3315_v9  ;;  %3211 = vset.pattern.permute.xlu0 %v3315_v9 }
   0x2   :  { %v3345_v4 = vand.u32 4294901760, %v12_v0  ;;  %v3347_v5 = vand.u32 4294901760, %v11_v1  ;;  %v3349_v6 = vand.u32 4294901760, %v14_v2  ;;  %v13_v7 = vld [vmem:[%s4215_s0 + $0x10] sm:$0xff]  ;;  %v959_v8 = vmul.f32 %v11_v1, %v11_v1 }
   0x3   :  { %8 = vsyncpa [#allocation3], 0  ;;  %v3356_v10 = vand.u32 4294901760, %v13_v7  ;;  %v960_v11 = vmul.f32 %v12_v0, %v12_v0  ;;  %v961_v12 = vmul.f32 %v13_v7, %v13_v7  ;;  %v962_v13 = vmul.f32 %v14_v2, %v14_v2  ;;  %s3318_s20 = smov [#allocation2]  }
   0x4   :  { %16 = vmatprep.subr.mxu0 %v3345_v4  ;;  %488 = vmatprep.subr.mxu1 %v3349_v6  ;;  %v3361_v14 = vsub.f32 %v12_v0, %v3345_v4  ;;  %v3364_v15 = vsub.f32 %v14_v2, %v3349_v6  ;;  %v3367_v16 = vsub.f32 %v11_v1, %v3347_v5  ;;  %v3369_v17 = vshrl.u32 %v983_v3, 7  ;;  %s3142_s21 = sshll.u32 %s3318_s20, 4  ;;  %s3143_s21 = int_to_ptr.vmem [resolvable:$true] %s3142_s21 }
   0x5   :  { %18 = vmatpush1.xpose.msra.mxu0 %v3347_v5  ;;  %490 = vmatpush1.xpose.msra.mxu1 %v3356_v10  ;;  %v3374_v18 = vsub.f32 %v13_v7, %v3356_v10  ;;  %v963_v19 = vadd.f32 %v960_v11, %v959_v8  ;;  %v3376_v20 = vand.u32 127, %v983_v3  ;;  %v966_v26 = vadd.f32 %v962_v13, %v961_v12  ;;  %p3296_p1 = scmp.lt.s32.totalorder %s3143_s21, %s3143_s21 }
   0x6   :  { %v3379_v21 = vand.u32 4294901760, %v3361_v14  ;;  %v3382_v22 = vand.u32 4294901760, %v3364_v15  ;;  %v3385_v23 = vand.u32 4294901760, %v3367_v16  ;;  %v3388_v24 = vsub.s32 0, %v3369_v17 }
   0x7   :  { %v3391_v25 = vand.u32 4294901760, %v3374_v18  ;;  %964 = vadd.xlane.f32.xlu0 %v963_v19  ;;  %vm1101_vm0 = vcmp.gt.s32.totalorder %v3376_v20, %v3369_v17  ;;  %v3415_v36 = vsub.s32 1, %v3369_v17  ;;  %v3434_v39 = vsub.s32 3, %v3369_v17 }
   0x8   :  { %v84_v27 = vsub.f32 %v3361_v14, %v3379_v21  ;;  %v556_v28 = vsub.f32 %v3364_v15, %v3382_v22  ;;  %v90_v29 = vsub.f32 %v3367_v16, %v3385_v23  ;;  %v3402_v30 = vsel %vm1101_vm0, 1, %v3315_v9 }
   0x9   :  { %v562_v31 = vsub.f32 %v3374_v18, %v3391_v25  ;;  %v1108_v32 = vrot.slane %v3402_v30, %v3388_v24  ;;  %v1115_v38 = vrot.slane %v3402_v30, %v3415_v36  ;;  %v1129_v40 = vrot.slane %v3402_v30, %v3434_v39 }
   0xa   :  { %v3408_v33 = vand.u32 4294901760, %v84_v27  ;;  %v3410_v34 = vand.u32 4294901760, %v556_v28  ;;  %v3412_v35 = vand.u32 4294901760, %v90_v29  ;;  %v3440_v41 = vsub.s32 4, %v3369_v17 }
   0xb   :  { %v3417_v37 = vand.u32 4294901760, %v562_v31  ;;  %967 = vadd.xlane.f32.xlu0 %v966_v26  ;;  %1110 = vbcast.lane.b32.xlu1 %v1108_v32, 256  ;;  %v3450_v42 = vsub.s32 2, %v3369_v17  ;;  %v3455_v44 = vsub.s32 6, %v3369_v17  ;;  %v3461_v46 = vsub.s32 5, %v3369_v17 }
   0xc   :  { %86 = vmatprep.mubr.f32.mxu0 %v3408_v33  ;;  %102 = vmatprep.subr.mxu0 %v3408_v33  ;;  %v1136_v43 = vrot.slane %v3402_v30, %v3440_v41  ;;  %v3475_v49 = vsub.s32 7, %v3369_v17  ;;  %v3316_v51 = vmov 0.0   ;;  %v3507_v63 = vsub.s32 %v3376_v20, %v3369_v17 }
   0xd   :  { %558 = vmatprep.mubr.f32.mxu1 %v3410_v34  ;;  %92 = vmatmul.mubr.f32.vlgmr.msra.gmra.mrb[0].mxu0 %v3412_v35  ;;  %v1122_v45 = vrot.slane %v3402_v30, %v3450_v42  ;;  %v1150_v47 = vrot.slane %v3402_v30, %v3455_v44  ;;  %v1143_v48 = vrot.slane %v3402_v30, %v3461_v46 }
   0xe   :  { %108 = vmatpush1.xpose.msra.mxu0 %v3412_v35  ;;  %564 = vmatmul.mubr.f32.vlgmr.msra.gmra.mrb[0].mxu1 %v3417_v37  ;;  %v1157_v50 = vrot.slane %v3402_v30, %v3475_v49 }
   0xf   :  { %574 = vmatprep.subr.mxu1 %v3410_v34  ;;  %172 = vmatprep.mubr.f32.mxu0 %v3345_v4 }
  0x10   :  { %580 = vmatpush1.xpose.msra.mxu1 %v3417_v37  ;;  %181 = vmatprep.subr.mxu0 %v3361_v14 }
  0x11   :  { %644 = vmatprep.mubr.f32.mxu1 %v3349_v6  ;;  %653 = vmatprep.subr.mxu1 %v3364_v15 }
  0x12   :  { %1117 = vbcast.lane.b32.xlu1 %v1115_v38, 256 }
  0x15   :  { %174 = vmatmul.mubr.f32.vlgmr.msra.gmra.mrb[0].mxu0 %v3347_v5 }
  0x16   :  { %184 = vmatpush1.xpose.msra.mxu0 %v3367_v16  ;;  %646 = vmatmul.mubr.f32.vlgmr.msra.gmra.mrb[0].mxu1 %v3356_v10 }
  0x17   :  { %656 = vmatpush1.xpose.msra.mxu1 %v3374_v18  ;;  %249 = vmatprep.mubr.f32.mxu0 %v3361_v14 }
  0x18   :  { %258 = vmatprep.subr.mxu0 %v3345_v4  ;;  %721 = vmatprep.mubr.f32.mxu1 %v3364_v15 }
  0x19   :  { %730 = vmatprep.subr.mxu1 %v3349_v6  ;;  %1131 = vbcast.lane.b32.xlu1 %v1129_v40, 256 }
  0x1d   :  { %252 = vmatmul.mubr.f32.vlgmr.msra.gmra.mrb[0].mxu0 %v3367_v16  ;;  %1138 = vbcast.lane.b32.xlu1 %v1136_v43, 256 }
  0x1e   :  { %260 = vmatpush1.xpose.msra.mxu0 %v3347_v5  ;;  %724 = vmatmul.mubr.f32.vlgmr.msra.gmra.mrb[0].mxu1 %v3374_v18 }
  0x1f   :  { %732 = vmatpush1.xpose.msra.mxu1 %v3356_v10  ;;  %326 = vmatprep.mubr.f32.mxu0 %v3379_v21 }
  0x20   :  { %338 = vmatprep.subr.mxu0 %v3379_v21  ;;  %798 = vmatprep.mubr.f32.mxu1 %v3382_v22 }
  0x21   :  { %810 = vmatprep.subr.mxu1 %v3382_v22  ;;  %1124 = vbcast.lane.b32.xlu0 %v1122_v45, 256 }
  0x22   :  { %1152 = vbcast.lane.b32.xlu1 %v1150_v47, 256 }
  0x25   :  { %330 = vmatmul.mubr.f32.vlgmr.msra.gmra.mrb[0].mxu0 %v3385_v23  ;;  %1145 = vbcast.lane.b32.xlu0 %v1143_v48, 256 }
  0x26   :  { %342 = vmatpush1.xpose.msra.mxu0 %v3385_v23  ;;  %802 = vmatmul.mubr.f32.vlgmr.msra.gmra.mrb[0].mxu1 %v3391_v25 }
  0x27   :  { %814 = vmatpush1.xpose.msra.mxu1 %v3391_v25  ;;  %406 = vmatprep.mubr.f32.mxu0 %v3345_v4 }
  0x28   :  { %414 = vmatprep.subr.mxu0 %v3345_v4  ;;  %878 = vmatprep.mubr.f32.mxu1 %v3349_v6 }
  0x29   :  { %886 = vmatprep.subr.mxu1 %v3349_v6  ;;  %1159 = vbcast.lane.b32.xlu0 %v1157_v50, 256 }
  0x2d   :  { %408 = vmatmul.mubr.f32.vlgmr.msra.gmra.mrb[0].mxu0 %v3347_v5 }
  0x2e   :  { %416 = vmatpush1.xpose.msra.mxu0 %v3347_v5  ;;  %880 = vmatmul.mubr.f32.vlgmr.msra.gmra.mrb[0].mxu1 %v3356_v10 }
  0x2f   :  { %888 = vmatpush1.xpose.msra.mxu1 %v3356_v10  ;;  %480 = vmatprep.mubr.f32.mxu0 %v3345_v4 }
  0x30   :  { %952 = vmatprep.mubr.f32.mxu1 %v3349_v6  ;;  %2099 = vmatprep.subr.mxu0 %v3345_v4 }
  0x31   :  { %2637 = vmatprep.subr.mxu1 %v3349_v6 }
  0x35   :  { %482 = vmatmul.mubr.f32.vlgmr.msra.gmra.mrb[0].mxu0 %v3347_v5 }
  0x36   :  { %954 = vmatmul.mubr.f32.vlgmr.msra.gmra.mrb[0].mxu1 %v3356_v10  ;;  %2101 = vmatpush1.msra.mxu0 %v3347_v5 }
  0x37   :  { %2639 = vmatpush1.msra.mxu1 %v3356_v10  ;;  %2181 = vmatprep.subr.mxu0 %v3408_v33 }
  0x38   :  { %2719 = vmatprep.subr.mxu1 %v3410_v34  ;;  %2164 = vmatprep.mubr.f32.mxu0 %v3316_v51 }
  0x39   :  { %2702 = vmatprep.mubr.f32.mxu1 %v3316_v51 }
  0x94   :  { %v965_v52 = vpop.xlane.xlu0 %964 }
  0x95   :  { %3287 = vrsqrt.f32 %v965_v52  ;;  %vm971_vm1 = vcmp.eq.f32.partialorder %v965_v52, inf  ;;  %v974_v58 = vand.u32 2147483648, %v965_v52  ;;  %vm973_vm3 = vcmp.eq.f32.partialorder %v965_v52, 0.0 }
  0x98   :  { %v968_v53 = vpop.xlane.xlu0 %967 }
  0x99   :  { %3289 = vrsqrt.f32 %v968_v53  ;;  %vm978_vm2 = vcmp.eq.f32.partialorder %v968_v53, inf  ;;  %v981_v60 = vand.u32 2147483648, %v968_v53  ;;  %vm980_vm4 = vcmp.eq.f32.partialorder %v968_v53, 0.0 }
  0x9f   :  { %v3288_v54 = vpop.eup %3287 }
  0xa0   :  { %v970_v56 = vmul.f32 %v3288_v54, %v965_v52 }
  0xa2   :  { %v972_v59 = vsel %vm971_vm1, %v965_v52, %v970_v56 }
  0xa3   :  { %v3290_v55 = vpop.eup %3289  ;;  %v3503_v62 = vsel %vm973_vm3, %v974_v58, %v972_v59 }
  0xa4   :  { %v977_v57 = vmul.f32 %v3290_v55, %v968_v53  ;;  %v1201_v1 = vadd.f32 1e-08, %v3503_v62 }
  0xa6   :  { %v979_v61 = vsel %vm978_vm2, %v968_v53, %v977_v57  ;;  %v1203_v3 = vmul.f32 0.7, %v1201_v1  ;;  %v1210_v7 = vrot.slane %v1201_v1, %v3507_v63  ;;  %v1111_v57 = vpop.permute.xlu1 %1110 }
  0xa7   :  { %v3509_v0 = vsel %vm980_vm4, %v981_v60, %v979_v61  ;;  %v1125_v60 = vpop.permute.xlu0 %1124  ;;  %vm4219_vm8 = vcmp.ne.s32.totalorder %v1111_v57, 0 }
  0xa8   :  { %v1202_v2 = vadd.f32 1e-08, %v3509_v0  ;;  %v1236_v12 = vmul.f32 %v1210_v7, %v1203_v3  ;;  %v996_v3 = vrot.slane %v3503_v62, %v3415_v36  ;;  %v1000_v7 = vrot.slane %v3503_v62, %v3450_v42 }
  0xa9   :  { %vm1163_vm12 = vcmp.ne.s32.totalorder %v1125_v60, 0  ;;  %v3657_v60 = vrot.slane %v3509_v0, %v3455_v44 }
  0xaa   :  { %v1204_v8 = vmul.f32 0.7, %v1202_v2  ;;  %v1214_v11 = vrot.slane %v1202_v2, %v3507_v63  ;;  %v3533_v58 = vpop.permute.xlu1 %1117  ;;  %v992_v2 = vrot.slane %v3503_v62, %v3388_v24  ;;  %vm1086_vm9 = vcmp.eq.f32.partialorder %v3503_v62, %v996_v3 }
  0xab   :  { %v3537_v1 = vpop.permute.xlu0 %1145  ;;  %vm4218_vm10 = vcmp.ne.s32.totalorder %v3533_v58, 0  ;;  %vm1087_vm11 = vcmp.eq.f32.partialorder %v3503_v62, %v1000_v7  ;;  %vm1070_vm3 = vcmp.gt.f32.partialorder %v3503_v62, %v996_v3  ;;  %v3685_v3 = vrot.slane %v3509_v0, %v3475_v49 }
  0xac   :  { %v1237_v19 = vmul.f32 %v1214_v11, %v1204_v8  ;;  %vm1085_vm7 = vcmp.eq.f32.partialorder %v3503_v62, %v992_v2  ;;  %vm1069_vm14 = vcmp.gt.f32.partialorder %v3503_v62, %v992_v2  ;;  %vm3567_vm15 = vmand %vm1086_vm9, %vm4218_vm10  ;;  %v3673_v2 = vrot.slane %v3503_v62, %v3455_v44 }
  0xad   :  { %vm1169_vm13 = vmand %vm1085_vm7, %vm4219_vm8 }
  0xae   :  { %v1132_v59 = vpop.permute.xlu1 %1131  ;;  %vm3580_vm2 = vmand %vm1087_vm11, %vm1163_vm12 }
  0xaf   :  { %v3547_v11 = vpop.permute.xlu0 %1159  ;;  %vm4220_vm4 = vcmp.ne.s32.totalorder %v1132_v59, 0 }
  0xb2   :  { %v3535_v61 = vpop.permute.xlu1 %1138 }
  0xb3   :  { %vm4221_vm8 = vcmp.ne.s32.totalorder %v3535_v61, 0 }
  0xb6   :  { %v3545_v8 = vpop.permute.xlu1 %1152 }
 0x108   :  { %v483_v13 = vpop.f32.mrb[0].mxu0 }
 0x109   :  { %vm1238_vm5 = vcmp.gt.f32.partialorder %v483_v13, %v1236_v12  ;;  %v955_v26 = vpop.f32.mrb[0].mxu1  ;;  %v485_v27 = vpop.f32.mrb[1].mxu0  ;;  %v3552_v12 = vrot.slane %v3509_v0, %v3434_v39 }
 0x10a   :  { %v1240_v28 = vsel %vm1238_vm5, 1, %v3315_v9  ;;  %vm1239_vm6 = vcmp.gt.f32.partialorder %v955_v26, %v1237_v19  ;;  %v957_v29 = vpop.f32.mrb[1].mxu1  ;;  %v3562_v26 = vrot.slane %v3509_v0, %v3450_v42  ;;  %vm1185_vm5 = vmor %vm1069_vm14, %vm1169_vm13 }
 0x10b   :  { %v1259_v30 = vrot.slane %v1240_v28, %v3450_v42  ;;  %v1245_v31 = vrot.slane %v1240_v28, %v3388_v24  ;;  %v1241_v32 = vsel %vm1239_vm6, 1, %v3315_v9  ;;  %v1252_v34 = vrot.slane %v1240_v28, %v3415_v36  ;;  %vm1186_vm13 = vmor %vm1070_vm3, %vm3567_vm15 }
 0x10c   :  { %v1322_v33 = vrot.slane %v1241_v32, %v3434_v39  ;;  %v1273_v38 = vrot.slane %v1240_v28, %v3440_v41  ;;  %v1301_v40 = vrot.slane %v1241_v32, %v3388_v24  ;;  %v1336_v43 = vrot.slane %v1241_v32, %v3461_v46 }
 0x10d   :  { %1261 = vbcast.lane.b32.xlu0 %v1259_v30, 256  ;;  %1247 = vbcast.lane.b32.xlu1 %v1245_v31, 256  ;;  %v1308_v45 = vrot.slane %v1241_v32, %v3415_v36  ;;  %v1343_v47 = vrot.slane %v1241_v32, %v3455_v44  ;;  %v1315_v48 = vrot.slane %v1241_v32, %v3450_v42  ;;  %v4262_v30 = vmov 0 }
 0x10e   :  { %v1350_v50 = vrot.slane %v1241_v32, %v3475_v49  ;;  %v1266_v52 = vrot.slane %v1240_v28, %v3434_v39  ;;  %v1329_v53 = vrot.slane %v1241_v32, %v3440_v41  ;;  %v1280_v54 = vrot.slane %v1240_v28, %v3461_v46 }
 0x10f   :  { %v1287_v55 = vrot.slane %v1240_v28, %v3455_v44  ;;  %v1294_v56 = vrot.slane %v1240_v28, %v3475_v49  ;;  %vm1096_vm0 = vcmp.eq.f32.partialorder %v3509_v0, %v3552_v12  ;;  %v3575_v28 = vrot.slane %v3503_v62, %v3440_v41 }
 0x110   :  { %v1024_v29 = vrot.slane %v3509_v0, %v3388_v24  ;;  %v3587_v31 = vrot.slane %v3503_v62, %v3434_v39  ;;  %vm3592_vm6 = vmand %vm1096_vm0, %vm4220_vm4  ;;  %vm1095_vm7 = vcmp.eq.f32.partialorder %v3509_v0, %v3562_v26  ;;  %vm1071_vm0 = vcmp.gt.f32.partialorder %v3503_v62, %v1000_v7 }
 0x111   :  { %1324 = vbcast.lane.b32.xlu0 %v1322_v33, 256  ;;  %1254 = vbcast.lane.b32.xlu1 %v1252_v34, 256  ;;  %v1028_v33 = vrot.slane %v3509_v0, %v3415_v36  ;;  %vm1089_vm10 = vcmp.eq.f32.partialorder %v3503_v62, %v3575_v28  ;;  %vm3614_vm4 = vmand %vm1095_vm7, %vm1163_vm12  ;;  %vm4245_vm7 = vcmp.ne.s32.totalorder %v1111_v57, 0 }
 0x112   :  { %vm1093_vm14 = vcmp.eq.f32.partialorder %v3509_v0, %v1024_v29  ;;  %vm3623_vm3 = vmand %vm1089_vm10, %vm4221_vm8  ;;  %vm1077_vm12 = vcmp.gt.f32.partialorder %v3509_v0, %v1024_v29  ;;  %vm4248_vm10 = vcmp.ne.s32.totalorder %v1132_v59, 0 }
 0x113   :  { %vm1094_vm15 = vcmp.eq.f32.partialorder %v3509_v0, %v1028_v33 }
 0x115   :  { %1275 = vbcast.lane.b32.xlu0 %v1273_v38, 256  ;;  %1303 = vbcast.lane.b32.xlu1 %v1301_v40, 256  ;;  %v3608_v40 = vrot.slane %v3509_v0, %v3440_v41 }
 0x117   :  { %vm1097_vm8 = vcmp.eq.f32.partialorder %v3509_v0, %v3608_v40 }
 0x119   :  { %1338 = vbcast.lane.b32.xlu0 %v1336_v43, 256  ;;  %1310 = vbcast.lane.b32.xlu1 %v1308_v45, 256  ;;  %v4241_v43 = vmov 0 }
 0x11a   :  { %v4242_v43 = vsel %vm3614_vm4, 4294967295, %v4241_v43  ;;  %vm4252_vm4 = vcmp.ne.s32.totalorder %v3535_v61, 0  ;;  %v4255_v61 = vmov 0 }
 0x11d   :  { %1345 = vbcast.lane.b32.xlu0 %v1343_v47, 256  ;;  %1317 = vbcast.lane.b32.xlu1 %v1315_v48, 256 }
 0x121   :  { %1352 = vbcast.lane.b32.xlu0 %v1350_v50, 256  ;;  %1268 = vbcast.lane.b32.xlu1 %v1266_v52, 256  ;;  %v4243_v50 = vmov 0  ;;  %v3629_v52 = vrot.slane %v3509_v0, %v3461_v46 }
 0x122   :  { %v4244_v50 = vsel %vm3623_vm3, 4294967295, %v4243_v50 }
 0x125   :  { %1331 = vbcast.lane.b32.xlu1 %v1329_v53, 256 }
 0x129   :  { %1282 = vbcast.lane.b32.xlu1 %v1280_v54, 256  ;;  %v4246_v54 = vmov 0 }
 0x12d   :  { %1289 = vbcast.lane.b32.xlu1 %v1287_v55, 256  ;;  %v4249_v55 = vmov 0 }
 0x131   :  { %1296 = vbcast.lane.b32.xlu1 %v1294_v56, 256  ;;  %v3648_v56 = vrot.slane %v3503_v62, %v3461_v46 }
 0x17f   :  { %v3557_v13 = vpop.permute.xlu0 %1261  ;;  %v1248_v19 = vpop.permute.xlu1 %1247 }
 0x180   :  { %vm1354_vm1 = vcmp.ne.s32.totalorder %v1248_v19, 0 }
 0x181   :  { %vm1370_vm9 = vmand %vm1185_vm5, %vm1354_vm1  ;;  %vm1088_vm5 = vcmp.eq.f32.partialorder %v3503_v62, %v3587_v31 }
 0x182   :  { %v1386_v45 = vsel %vm1370_vm9, 1.0, %v3316_v51  ;;  %vm1177_vm9 = vmand %vm1093_vm14, %vm4245_vm7  ;;  %vm1078_vm14 = vcmp.gt.f32.partialorder %v3509_v0, %v1028_v33 }
 0x183   :  { %v1255_v32 = vpop.permute.xlu1 %1254  ;;  %v3601_v38 = vpop.permute.xlu0 %1324  ;;  %vm1193_vm7 = vmor %vm1077_vm12, %vm1177_vm9  ;;  %vm1090_vm9 = vcmp.eq.f32.partialorder %v3503_v62, %v3648_v56 }
 0x184   :  { %vm1355_vm11 = vcmp.ne.s32.totalorder %v1255_v32, 0 }
 0x185   :  { %vm1371_vm1 = vmand %vm1186_vm13, %vm1355_vm11 }
 0x186   :  { %v1387_v47 = vsel %vm1371_vm1, 1.0, %v3316_v51  ;;  %vm3635_vm11 = vmor %vm1071_vm0, %vm3580_vm2  ;;  %vm4251_vm2 = vcmp.ne.s32.totalorder %v3533_v58, 0  ;;  %v4253_v58 = vmov 0 }
 0x187   :  { %v1304_v48 = vpop.permute.xlu1 %1303  ;;  %v3206_v53 = vpack.i.bf16 %v1387_v47, %v1386_v45  ;;  %v4247_v54 = vsel %vm3635_vm11, 4294967295, %v4246_v54  ;;  %vm3640_vm1 = vmand %vm1088_vm5, %vm4248_vm10  ;;  %v1276_v57 = vpop.permute.xlu0 %1275  ;;  %vm1098_vm5 = vcmp.eq.f32.partialorder %v3509_v0, %v3629_v52  ;;  %vm1080_vm10 = vcmp.gt.f32.partialorder %v3509_v0, %v3552_v12 }
 0x188   :  { %vm1362_vm13 = vcmp.ne.s32.totalorder %v1304_v48, 0  ;;  %v4250_v55 = vsel %vm3640_vm1, 4294967295, %v4249_v55  ;;  %vm1178_vm0 = vmand %vm1094_vm15, %vm4251_vm2  ;;  %vm1356_vm15 = vcmp.ne.s32.totalorder %v3557_v13, 0  ;;  %vm1166_vm2 = vcmp.ne.s32.totalorder %v3537_v1, 0 }
 0x189   :  { %3207 = vperm.xlu1 %3205, %v3206_v53   ;;  %vm1378_vm1 = vmand %vm1193_vm7, %vm1362_vm13  ;;  %vm1079_vm7 = vcmp.gt.f32.partialorder %v3509_v0, %v3562_v26  ;;  %v3725_v1 = vrot.slane %v3503_v62, %v3475_v49  ;;  %v4265_v26 = vmov 0 }
 0x18a   :  { %vm3663_vm11 = vmand %vm1097_vm8, %vm4252_vm4  ;;  %v1394_v12 = vsel %vm1378_vm1, 1.0, %v3316_v51 }
 0x18b   :  { %v1311_v59 = vpop.permute.xlu1 %1310  ;;  %v4254_v58 = vsel %vm3663_vm11, 4294967295, %v4253_v58  ;;  %vm1194_vm12 = vmor %vm1078_vm14, %vm1178_vm0  ;;  %vm4259_vm14 = vnez %v4247_v54  ;;  %v1339_v32 = vpop.permute.xlu0 %1338 }
 0x18c   :  { %vm1363_vm3 = vcmp.ne.s32.totalorder %v1311_v59, 0  ;;  %vm3679_vm8 = vmand %vm1098_vm5, %vm1166_vm2 }
 0x18d   :  { %vm1379_vm13 = vmand %vm1194_vm12, %vm1363_vm3  ;;  %v4256_v61 = vsel %vm3679_vm8, 4294967295, %v4255_v61  ;;  %vm1099_vm3 = vcmp.eq.f32.partialorder %v3509_v0, %v3657_v60 }
 0x18e   :  { %vm3689_vm4 = vmor %vm1080_vm10, %vm3592_vm6  ;;  %v1395_v13 = vsel %vm1379_vm13, 1.0, %v3316_v51  ;;  %vm1073_vm6 = vcmp.gt.f32.partialorder %v3503_v62, %v3575_v28  ;;  %vm1365_vm10 = vcmp.ne.s32.totalorder %v3601_v38, 0 }
 0x18f   :  { %v1318_v19 = vpop.permute.xlu1 %1317  ;;  %vm3699_vm0 = vmand %vm4259_vm14, %vm1356_vm15  ;;  %v3212_v29 = vpack.i.bf16 %v1395_v13, %v1394_v12  ;;  %vm4264_vm15 = vnez %v4242_v43  ;;  %vm1167_vm14 = vcmp.ne.s32.totalorder %v3545_v8, 0 }
 0x190   :  { %vm1364_vm5 = vcmp.ne.s32.totalorder %v1318_v19, 0  ;;  %vm3710_vm1 = vmand %vm1090_vm9, %vm1166_vm2  ;;  %vm1072_vm2 = vcmp.gt.f32.partialorder %v3503_v62, %v3587_v31  ;;  %v1388_v33 = vsel %vm3699_vm0, 1.0, %v3316_v51 }
 0x191   :  { %v4263_v30 = vsel %vm3710_vm1, 4294967295, %v4262_v30  ;;  %vm1195_vm12 = vmor %vm1079_vm7, %vm4264_vm15  ;;  %3213 = vperm.xlu0 %3211, %v3212_v29   ;;  %vm4267_vm15 = vnez %v4244_v50  ;;  %vm1081_vm1 = vcmp.gt.f32.partialorder %v3509_v0, %v3608_v40  ;;  %v1346_v40 = vpop.permute.xlu0 %1345  ;;  %v4277_v50 = vmov 0 }
 0x192   :  { %vm1380_vm9 = vmand %vm1195_vm12, %vm1364_vm5  ;;  %vm1358_vm12 = vcmp.ne.s32.totalorder %v1276_v57, 0 }
 0x193   :  { %vm3734_vm7 = vmand %vm1099_vm3, %vm1167_vm14  ;;  %v1396_v34 = vsel %vm1380_vm9, 1.0, %v3316_v51  ;;  %v1269_v43 = vpop.permute.xlu1 %1268  ;;  %vm1100_vm3 = vcmp.eq.f32.partialorder %v3509_v0, %v3685_v3  ;;  %vm4273_vm9 = vnez %v4250_v55 }
 0x194   :  { %v4266_v26 = vsel %vm3734_vm7, 4294967295, %v4265_v26  ;;  %vm3746_vm5 = vmor %vm1073_vm6, %vm4267_vm15  ;;  %v3217_v45 = vpack.i.bf16 %v1396_v34, %v1388_v33  ;;  %vm1357_vm13 = vcmp.ne.s32.totalorder %v1269_v43, 0  ;;  %vm4270_vm6 = vcmp.eq.f32.partialorder %v3503_v62, %v3673_v2 }
 0x195   :  { %vm1381_vm0 = vmand %vm3689_vm4, %vm1365_vm10  ;;  %vm1092_vm4 = vcmp.eq.f32.partialorder %v3503_v62, %v3725_v1  ;;  %vm1168_vm10 = vcmp.ne.s32.totalorder %v3547_v11, 0 }
 0x196   :  { %vm3762_vm15 = vmand %vm4270_vm6, %vm1167_vm14  ;;  %3218 = vperm.xlu1 %3205, %v3217_v45   ;;  %v1397_v38 = vsel %vm1381_vm0, 1.0, %v3316_v51  ;;  %vm1367_vm6 = vcmp.ne.s32.totalorder %v1339_v32, 0 }
 0x197   :  { %vm1188_vm7 = vmor %vm1072_vm2, %vm4273_vm9  ;;  %vm1082_vm2 = vcmp.gt.f32.partialorder %v3509_v0, %v3629_v52  ;;  %v1332_v48 = vpop.permute.xlu1 %1331 }
 0x198   :  { %vm1373_vm8 = vmand %vm1188_vm7, %vm1357_vm13  ;;  %vm4276_vm13 = vnez %v4254_v58 }
 0x199   :  { %vm3773_vm11 = vmand %vm1100_vm3, %vm1168_vm10  ;;  %v1389_v47 = vsel %vm1373_vm8, 1.0, %v3316_v51  ;;  %vm1366_vm3 = vcmp.ne.s32.totalorder %v1332_v48, 0  ;;  %vm4279_vm8 = vnez %v4256_v61 }
 0x19a   :  { %vm1374_vm14 = vmand %vm3746_vm5, %vm1358_vm12  ;;  %v3222_v11 = vpack.i.bf16 %v1397_v38, %v1389_v47  ;;  %vm1074_vm12 = vcmp.gt.f32.partialorder %v3503_v62, %v3648_v56  ;;  %v1353_v56 = vpop.permute.xlu0 %1352 }
 0x19b   :  { %vm1197_vm7 = vmor %vm1081_vm1, %vm4276_vm13  ;;  %v1390_v52 = vsel %vm1374_vm14, 1.0, %v3316_v51  ;;  %vm1083_vm13 = vcmp.gt.f32.partialorder %v3509_v0, %v3657_v60  ;;  %v1283_v55 = vpop.permute.xlu1 %1282  ;;  %vm1075_vm14 = vcmp.gt.f32.partialorder %v3503_v62, %v3673_v2 }
 0x19c   :  { %vm3788_vm0 = vmand %vm1092_vm4, %vm1168_vm10  ;;  %3223 = vperm.xlu1 %3205, %v3222_v11   ;;  %vm1368_vm4 = vcmp.ne.s32.totalorder %v1346_v40, 0  ;;  %vm4280_vm10 = vnez %v4263_v30 }
 0x19d   :  { %v4278_v50 = vsel %vm3788_vm0, 4294967295, %v4277_v50  ;;  %vm1382_vm5 = vmand %vm1197_vm7, %vm1366_vm3  ;;  %vm1359_vm3 = vcmp.ne.s32.totalorder %v1283_v55, 0 }
 0x19e   :  { %vm1198_vm9 = vmor %vm1082_vm2, %vm4279_vm8  ;;  %v1398_v53 = vsel %vm1382_vm5, 1.0, %v3316_v51  ;;  %vm4281_vm2 = vnez %v4266_v26  ;;  %vm1084_vm8 = vcmp.gt.f32.partialorder %v3509_v0, %v3685_v3 }
 0x19f   :  { %vm1383_vm1 = vmand %vm1198_vm9, %vm1367_vm6  ;;  %v3227_v54 = vpack.i.bf16 %v1398_v53, %v1390_v52  ;;  %v1290_v58 = vpop.permute.xlu1 %1289 }
 0x1a0   :  { %vm1190_vm7 = vmor %vm1074_vm12, %vm4280_vm10  ;;  %v1399_v57 = vsel %vm1383_vm1, 1.0, %v3316_v51  ;;  %vm1369_vm12 = vcmp.ne.s32.totalorder %v1353_v56, 0  ;;  %vm1360_vm10 = vcmp.ne.s32.totalorder %v1290_v58, 0  ;;  %vm1076_vm1 = vcmp.gt.f32.partialorder %v3503_v62, %v3725_v1 }
 0x1a1   :  { %vm1375_vm0 = vmand %vm1190_vm7, %vm1359_vm3  ;;  %3228 = vperm.xlu0 %3211, %v3227_v54  }
 0x1a2   :  { %vm1199_vm6 = vmor %vm1083_vm13, %vm4281_vm2  ;;  %v1391_v59 = vsel %vm1375_vm0, 1.0, %v3316_v51  ;;  %vm1673_vm13 = vcmp.lt.s32.totalorder %v3376_v20, %v3369_v17 }
 0x1a3   :  { %vm1384_vm5 = vmand %vm1199_vm6, %vm1368_vm4  ;;  %v3232_v60 = vpack.i.bf16 %v1399_v57, %v1391_v59  ;;  %v1297_v7 = vpop.permute.xlu1 %1296  ;;  %v3823_v12 = vsel %vm1673_vm13, 1, %v3315_v9  ;;  %vm4228_vm6 = vcmask 1042434  }
 0x1a4   :  { %vm1191_vm9 = vmor %vm1075_vm14, %vm3762_vm15  ;;  %v1400_v2 = vsel %vm1384_vm5, 1.0, %v3316_v51  ;;  %vm4282_vm15 = vnez %v4278_v50  ;;  %vm1361_vm14 = vcmp.ne.s32.totalorder %v1297_v7, 0  ;;  %v1680_v20 = vrot.slane %v3823_v12, %v3388_v24 }
 0x1a5   :  { %vm1376_vm7 = vmand %vm1191_vm9, %vm1360_vm10  ;;  %3233 = vperm.xlu1 %3205, %v3232_v60   ;;  %v1687_v29 = vrot.slane %v3823_v12, %v3415_v36  ;;  %v1694_v30 = vrot.slane %v3823_v12, %v3450_v42  ;;  %v1701_v32 = vrot.slane %v3823_v12, %v3434_v39  ;;  %v1708_v1 = vrot.slane %v3823_v12, %v3440_v41 }
 0x1a6   :  { %vm1200_vm0 = vmor %vm1084_vm8, %vm3773_vm11  ;;  %v1392_v61 = vsel %vm1376_vm7, 1.0, %v3316_v51  ;;  %v1715_v26 = vrot.slane %v3823_v12, %v3461_v46  ;;  %vm4229_vm11 = vcmask 1041409   ;;  %vm4227_vm5 = vcmask 1043459  }
 0x1a7   :  { %vm1385_vm4 = vmand %vm1200_vm0, %vm1369_vm12  ;;  %v3237_v3 = vpack.i.bf16 %v1400_v2, %v1392_v61  ;;  %vm4226_vm8 = vcmask 1044484   ;;  %vm4225_vm12 = vcmask 1045509   ;;  %vm4224_vm9 = vcmask 1046534  }
 0x1a8   :  { %vm1192_vm3 = vmor %vm1076_vm1, %vm4282_vm15  ;;  %v1401_v13 = vsel %vm1385_vm4, 1.0, %v3316_v51  ;;  %vm4223_vm10 = vcmask 1047559   ;;  %vm4222_vm7 = vcmask 64512   ;;  %vm3317_vm0 = vmmov 1  }
 0x1a9   :  { %vm1377_vm2 = vmand %vm1192_vm3, %vm1361_vm14  ;;  %3238 = vperm.xlu0 %3211, %v3237_v3  }
 0x1aa   :  { %v1393_v19 = vsel %vm1377_vm2, 1.0, %v3316_v51 }
 0x1ab   :  { %v3242_v27 = vpack.i.bf16 %v1401_v13, %v1393_v19 }
 0x1ad   :  { %3243 = vperm.xlu1 %3205, %v3242_v27   ;;  %1682 = vbcast.lane.b32.xlu0 %v1680_v20, 256 }
 0x1b1   :  { %1689 = vbcast.lane.b32.xlu1 %v1687_v29, 256  ;;  %1696 = vbcast.lane.b32.xlu0 %v1694_v30, 256 }
 0x1b5   :  { %1703 = vbcast.lane.b32.xlu1 %v1701_v32, 256  ;;  %1710 = vbcast.lane.b32.xlu0 %v1708_v1, 256 }
 0x1b9   :  { %1717 = vbcast.lane.b32.xlu1 %v1715_v26, 256 }
 0x208   :  { %v3208_v33 = vpop.permute.xlu1 %3207 }
 0x209   :  { %v3210_v45 = vunpack.i.h.bf16 %v3208_v33  ;;  %v3209_v28 = vunpack.i.l.bf16 %v3208_v33 }
 0x20b   :  { %v1473_v53 = vrot.slane %v3210_v45, %v3507_v63  ;;  %v1469_v54 = vrot.slane %v3209_v28, %v3507_v63 }
 0x20d   :  { %v1530_v30 = vsel %vm4229_vm11, %v1473_v53, %v1469_v54 }
 0x210   :  { %v3214_v34 = vpop.permute.xlu0 %3213 }
 0x211   :  { %v3216_v8 = vunpack.i.h.bf16 %v3214_v34  ;;  %v3215_v38 = vunpack.i.l.bf16 %v3214_v34 }
 0x213   :  { %v1505_v57 = vrot.slane %v3216_v8, %v3507_v63  ;;  %v1501_v59 = vrot.slane %v3215_v38, %v3507_v63 }
 0x215   :  { %v3219_v31 = vpop.permute.xlu1 %3218  ;;  %v1537_v32 = vsel %vm4229_vm11, %v1505_v57, %v1501_v59 }
 0x216   :  { %v3221_v47 = vunpack.i.h.bf16 %v3219_v31  ;;  %v3220_v48 = vunpack.i.l.bf16 %v3219_v31 }
 0x218   :  { %v1509_v2 = vrot.slane %v3221_v47, %v3507_v63  ;;  %v1477_v61 = vrot.slane %v3220_v48, %v3507_v63 }
 0x21a   :  { %v1538_v33 = vsel %vm4228_vm6, %v1509_v2, %v1537_v32  ;;  %v1531_v31 = vsel %vm4228_vm6, %v1477_v61, %v1530_v30  ;;  %v1722_v2 = vrot.slane %v3823_v12, %v3455_v44  ;;  %v4283_v30 = vmov 0 }
 0x21b   :  { %v3224_v43 = vpop.permute.xlu1 %3223  ;;  %v4285_v32 = vmov 0 }
 0x21c   :  { %v3226_v50 = vunpack.i.h.bf16 %v3224_v43  ;;  %v3225_v52 = vunpack.i.l.bf16 %v3224_v43 }
 0x21e   :  { %v1513_v7 = vrot.slane %v3226_v50, %v3507_v63  ;;  %v1481_v20 = vrot.slane %v3225_v52, %v3507_v63 }
 0x220   :  { %v3229_v40 = vpop.permute.xlu0 %3228  ;;  %v1532_v28 = vsel %vm4227_vm5, %v1481_v20, %v1531_v31  ;;  %v1539_v8 = vsel %vm4227_vm5, %v1513_v7, %v1538_v33 }
 0x221   :  { %v3231_v55 = vunpack.i.h.bf16 %v3229_v40  ;;  %v3230_v56 = vunpack.i.l.bf16 %v3229_v40 }
 0x223   :  { %v1517_v27 = vrot.slane %v3231_v55, %v3507_v63  ;;  %v1485_v29 = vrot.slane %v3230_v56, %v3507_v63 }
 0x224   :  { %v3234_v11 = vpop.permute.xlu1 %3233 }
 0x225   :  { %v3236_v60 = vunpack.i.h.bf16 %v3234_v11  ;;  %v3235_v58 = vunpack.i.l.bf16 %v3234_v11  ;;  %v1540_v47 = vsel %vm4226_vm8, %v1517_v27, %v1539_v8  ;;  %v1533_v48 = vsel %vm4226_vm8, %v1485_v29, %v1532_v28 }
 0x227   :  { %v1521_v1 = vrot.slane %v3236_v60, %v3507_v63  ;;  %v1489_v26 = vrot.slane %v3235_v58, %v3507_v63  ;;  %v1729_v58 = vrot.slane %v3823_v12, %v3475_v49 }
 0x228   :  { %v3239_v3 = vpop.permute.xlu0 %3238 }
 0x229   :  { %v3241_v13 = vunpack.i.h.bf16 %v3239_v3  ;;  %v3240_v19 = vunpack.i.l.bf16 %v3239_v3  ;;  %v1541_v52 = vsel %vm4225_vm12, %v1521_v1, %v1540_v47  ;;  %v1534_v53 = vsel %vm4225_vm12, %v1489_v26, %v1533_v48 }
 0x22b   :  { %v1525_v34 = vrot.slane %v3241_v13, %v3507_v63  ;;  %v1493_v43 = vrot.slane %v3240_v19, %v3507_v63 }
 0x22c   :  { %v3244_v45 = vpop.permute.xlu1 %3243  ;;  %v1683_v3 = vpop.permute.xlu0 %1682 }
 0x22d   :  { %v3246_v38 = vunpack.i.h.bf16 %v3244_v45  ;;  %v3245_v40 = vunpack.i.l.bf16 %v3244_v45  ;;  %v1542_v54 = vsel %vm4224_vm9, %v1525_v34, %v1541_v52  ;;  %v1535_v55 = vsel %vm4224_vm9, %v1493_v43, %v1534_v53 }
 0x22f   :  { %v1529_v11 = vrot.slane %v3246_v38, %v3507_v63  ;;  %v1497_v50 = vrot.slane %v3245_v40, %v3507_v63 }
 0x230   :  { %v1690_v61 = vpop.permute.xlu1 %1689  ;;  %v1697_v20 = vpop.permute.xlu0 %1696 }
 0x231   :  { %v1543_v56 = vsel %vm4223_vm10, %v1529_v11, %v1542_v54  ;;  %v1536_v57 = vsel %vm4223_vm10, %v1497_v50, %v1535_v55  ;;  %vm1734_vm2 = vcmp.ne.s32.totalorder %v1690_v61, 0 }
 0x232   :  { %v1550_v59 = vsel %vm4222_vm7, %v1543_v56, -inf  ;;  %v1547_v60 = vsel %vm4222_vm7, %v1536_v57, -inf }
 0x233   :  { %1551 = vmax.xlane.f32.xlu1 %v1550_v59  ;;  %1548 = vmax.xlane.f32.xlu0 %v1547_v60  ;;  %v4292_v60 = vmov 0 }
 0x234   :  { %v3875_v7 = vpop.permute.xlu1 %1703  ;;  %v3879_v19 = vpop.permute.xlu0 %1710 }
 0x238   :  { %v3877_v13 = vpop.permute.xlu1 %1717 }
 0x244   :  { %1731 = vbcast.lane.b32.xlu1 %v1729_v58, 256 }
 0x249   :  { %1724 = vbcast.lane.b32.xlu0 %v1722_v2, 256 }
 0x2c0   :  { %v1552_v27 = vpop.xlane.xlu1 %1551  ;;  %v1549_v29 = vpop.xlane.xlu0 %1548 }
 0x2c1   :  { %vm1553_vm1 = vcmp.gt.f32.partialorder %v1549_v29, 0.0  ;;  %vm1554_vm13 = vcmp.gt.f32.partialorder %v1552_v27, 0.0 }
 0x2c2   :  { %vm3881_vm4 = vmxor %vm1553_vm1, %vm3317_vm0 }
 0x2c3   :  { %v4284_v30 = vsel %vm3881_vm4, 4294967295, %v4283_v30  ;;  %v3888_v12 = vsel %vm3881_vm4, %v3503_v62, inf  ;;  %vm3890_vm15 = vmxor %vm1554_vm13, %vm3317_vm0  ;;  %vm1733_vm13 = vcmp.ne.s32.totalorder %v1683_v3, 0 }
 0x2c4   :  { %v4286_v32 = vsel %vm3890_vm15, 4294967295, %v4285_v32  ;;  %v1568_v1 = vrot.slane %v3888_v12, %v3415_v36  ;;  %v3899_v26 = vsel %vm3890_vm15, %v3509_v0, inf  ;;  %v1564_v33 = vrot.slane %v3888_v12, %v3388_v24  ;;  %v1725_v34 = vpop.permute.xlu0 %1724  ;;  %v1732_v3 = vpop.permute.xlu1 %1731 }
 0x2c5   :  { %v3905_v31 = vrot.slane %v3899_v26, %v3455_v44  ;;  %v1600_v62 = vrot.slane %v3899_v26, %v3415_v36  ;;  %v1596_v0 = vrot.slane %v3899_v26, %v3388_v24  ;;  %vm4230_vm9 = vcmp.ne.s32.totalorder %v1725_v34, 0 }
 0x2c6   :  { %vm1658_vm3 = vcmp.eq.f32.partialorder %v3888_v12, %v1568_v1  ;;  %vm1642_vm14 = vcmp.lt.f32.partialorder %v3888_v12, %v1568_v1  ;;  %vm1657_vm1 = vcmp.eq.f32.partialorder %v3888_v12, %v1564_v33  ;;  %vm1641_vm7 = vcmp.lt.f32.partialorder %v3888_v12, %v1564_v33 }
 0x2c7   :  { %vm1742_vm0 = vmand %vm1658_vm3, %vm1734_vm2  ;;  %vm1671_vm10 = vcmp.eq.f32.partialorder %v3899_v26, %v3905_v31  ;;  %vm1666_vm8 = vcmp.eq.f32.partialorder %v3899_v26, %v1600_v62  ;;  %v1604_v43 = vrot.slane %v3899_v26, %v3450_v42  ;;  %vm1650_vm6 = vcmp.lt.f32.partialorder %v3899_v26, %v1600_v62 }
 0x2c8   :  { %vm1758_vm12 = vmor %vm1642_vm14, %vm1742_vm0  ;;  %vm1665_vm11 = vcmp.eq.f32.partialorder %v3899_v26, %v1596_v0  ;;  %v1572_v28 = vrot.slane %v3888_v12, %v3450_v42  ;;  %v1608_v40 = vrot.slane %v3899_v26, %v3434_v39  ;;  %v3943_v48 = vrot.slane %v3888_v12, %v3455_v44 }
 0x2c9   :  { %v1774_v45 = vsel %vm1758_vm12, 1, %v3315_v9  ;;  %vm1741_vm5 = vmand %vm1657_vm1, %vm1733_vm13  ;;  %vm1649_vm1 = vcmp.lt.f32.partialorder %v3899_v26, %v1596_v0  ;;  %v1576_v11 = vrot.slane %v3888_v12, %v3434_v39  ;;  %v1612_v52 = vrot.slane %v3899_v26, %v3440_v41 }
 0x2ca   :  { %1793 = vperm.xlu1 %3205, %v1774_v45   ;;  %vm1757_vm3 = vmor %vm1641_vm7, %vm1741_vm5  ;;  %vm1667_vm5 = vcmp.eq.f32.partialorder %v3899_v26, %v1604_v43  ;;  %vm1651_vm7 = vcmp.lt.f32.partialorder %v3899_v26, %v1604_v43  ;;  %v1580_v54 = vrot.slane %v3888_v12, %v3440_v41  ;;  %v1616_v56 = vrot.slane %v3899_v26, %v3461_v46 }
 0x2cb   :  { %vm3928_vm14 = vmand %vm1671_vm10, %vm4230_vm9  ;;  %v1773_v38 = vsel %vm1757_vm3, 1, %v3315_v9  ;;  %vm1735_vm9 = vcmp.ne.s32.totalorder %v1697_v20, 0  ;;  %vm1643_vm3 = vcmp.lt.f32.partialorder %v3888_v12, %v1572_v28  ;;  %vm1737_vm15 = vcmp.ne.s32.totalorder %v3879_v19, 0 }
 0x2cc   :  { %vm1750_vm12 = vmand %vm1666_vm8, %vm1734_vm2  ;;  %1790 = vperm.xlu0 %3211, %v1773_v38   ;;  %v1584_v58 = vrot.slane %v3888_v12, %v3461_v46  ;;  %v1624_v61 = vrot.slane %v3899_v26, %v3475_v49  ;;  %v1592_v20 = vrot.slane %v3888_v12, %v3475_v49 }
 0x2cd   :  { %vm1766_vm0 = vmor %vm1650_vm6, %vm1750_vm12  ;;  %vm1659_vm6 = vcmp.eq.f32.partialorder %v3888_v12, %v1572_v28 }
 0x2ce   :  { %v1782_v47 = vsel %vm1766_vm0, 1, %v3315_v9  ;;  %vm1749_vm10 = vmand %vm1665_vm11, %vm1733_vm13  ;;  %vm1668_vm13 = vcmp.eq.f32.partialorder %v3899_v26, %v1608_v40  ;;  %vm1736_vm0 = vcmp.ne.s32.totalorder %v3875_v7, 0 }
 0x2cf   :  { %1817 = vperm.xlu1 %3205, %v1782_v47   ;;  %vm1765_vm8 = vmor %vm1649_vm1, %vm1749_vm10  ;;  %vm1652_vm1 = vcmp.lt.f32.partialorder %v3899_v26, %v1608_v40  ;;  %vm1663_vm10 = vcmp.eq.f32.partialorder %v3888_v12, %v3943_v48 }
 0x2d0   :  { %v1781_v50 = vsel %vm1765_vm8, 1, %v3315_v9  ;;  %vm1751_vm2 = vmand %vm1667_vm5, %vm1735_vm9  ;;  %vm1660_vm8 = vcmp.eq.f32.partialorder %v3888_v12, %v1576_v11 }
 0x2d1   :  { %1814 = vperm.xlu0 %3211, %v1781_v50   ;;  %vm1767_vm11 = vmor %vm1651_vm7, %vm1751_vm2  ;;  %vm1655_vm7 = vcmp.lt.f32.partialorder %v3899_v26, %v3905_v31 }
 0x2d2   :  { %v1783_v53 = vsel %vm1767_vm11, 1, %v3315_v9  ;;  %vm1743_vm12 = vmand %vm1659_vm6, %vm1735_vm9  ;;  %vm1644_vm6 = vcmp.lt.f32.partialorder %v3888_v12, %v1576_v11  ;;  %vm1669_vm11 = vcmp.eq.f32.partialorder %v3899_v26, %v1612_v52 }
 0x2d3   :  { %1820 = vperm.xlu1 %3205, %v1783_v53   ;;  %vm1759_vm5 = vmor %vm1643_vm3, %vm1743_vm12  ;;  %vm4289_vm3 = vcmp.ne.s32.totalorder %v1725_v34, 0 }
 0x2d4   :  { %v1775_v55 = vsel %vm1759_vm5, 1, %v3315_v9  ;;  %vm1752_vm9 = vmand %vm1668_vm13, %vm1736_vm0  ;;  %vm1653_vm13 = vcmp.lt.f32.partialorder %v3899_v26, %v1612_v52 }
 0x2d5   :  { %1796 = vperm.xlu0 %3211, %v1775_v55   ;;  %vm1768_vm2 = vmor %vm1652_vm1, %vm1752_vm9  ;;  %vm1661_vm9 = vcmp.eq.f32.partialorder %v3888_v12, %v1580_v54 }
 0x2d6   :  { %vm3971_vm12 = vmand %vm1663_vm10, %vm4289_vm3  ;;  %v1784_v59 = vsel %vm1768_vm2, 1, %v3315_v9  ;;  %vm1654_vm2 = vcmp.lt.f32.partialorder %v3899_v26, %v1616_v56  ;;  %vm1738_vm3 = vcmp.ne.s32.totalorder %v3877_v13, 0 }
 0x2d7   :  { %vm1744_vm5 = vmand %vm1660_vm8, %vm1736_vm0  ;;  %1823 = vperm.xlu1 %3205, %v1784_v59   ;;  %vm1645_vm8 = vcmp.lt.f32.partialorder %v3888_v12, %v1580_v54 }
 0x2d8   :  { %vm3982_vm1 = vmor %vm1655_vm7, %vm3928_vm14  ;;  %vm1670_vm7 = vcmp.eq.f32.partialorder %v3899_v26, %v1616_v56 }
 0x2d9   :  { %v4293_v60 = vsel %vm3982_vm1, 4294967295, %v4292_v60  ;;  %vm1760_vm10 = vmor %vm1644_vm6, %vm1744_vm5  ;;  %vm1662_vm5 = vcmp.eq.f32.partialorder %v3888_v12, %v1584_v58 }
 0x2da   :  { %v1776_v2 = vsel %vm1760_vm10, 1, %v3315_v9  ;;  %vm1753_vm0 = vmand %vm1669_vm11, %vm1737_vm15  ;;  %vm1646_vm10 = vcmp.lt.f32.partialorder %v3888_v12, %v1584_v58 }
 0x2db   :  { %1799 = vperm.xlu0 %3211, %v1776_v2   ;;  %vm1769_vm14 = vmor %vm1653_vm13, %vm1753_vm0  ;;  %vm1672_vm0 = vcmp.eq.f32.partialorder %v3899_v26, %v1624_v61 }
 0x2dc   :  { %v1785_v7 = vsel %vm1769_vm14, 1, %v3315_v9  ;;  %vm1745_vm6 = vmand %vm1661_vm9, %vm1737_vm15  ;;  %vm1740_vm14 = vcmp.ne.s32.totalorder %v1732_v3, 0  ;;  %vm1647_vm9 = vcmp.lt.f32.partialorder %v3888_v12, %v3943_v48 }
 0x2dd   :  { %1826 = vperm.xlu1 %3205, %v1785_v7   ;;  %vm1761_vm11 = vmor %vm1645_vm8, %vm1745_vm6  ;;  %vm1664_vm8 = vcmp.eq.f32.partialorder %v3888_v12, %v1592_v20 }
 0x2de   :  { %v1777_v27 = vsel %vm1761_vm11, 1, %v3315_v9  ;;  %vm1754_vm13 = vmand %vm1670_vm7, %vm1738_vm3  ;;  %vm1656_vm11 = vcmp.lt.f32.partialorder %v3899_v26, %v1624_v61 }
 0x2df   :  { %1802 = vperm.xlu0 %3211, %v1777_v27   ;;  %vm1770_vm15 = vmor %vm1654_vm2, %vm1754_vm13  ;;  %vm1648_vm2 = vcmp.lt.f32.partialorder %v3888_v12, %v1592_v20 }
 0x2e0   :  { %v1786_v13 = vsel %vm1770_vm15, 1, %v3315_v9  ;;  %vm1746_vm4 = vmand %vm1662_vm5, %vm1738_vm3  ;;  %vm4294_vm3 = vnez %v4293_v60  ;;  %vm4300_vm15 = vcmask 1044484  }
 0x2e1   :  { %1829 = vperm.xlu1 %3205, %v1786_v13   ;;  %vm1762_vm6 = vmor %vm1646_vm10, %vm1746_vm4  ;;  %v1787_v29 = vsel %vm4294_vm3, 1, %v3315_v9  ;;  %vm4308_vm3 = vcmask 64512  }
 0x2e2   :  { %vm1756_vm7 = vmand %vm1672_vm0, %vm1740_vm14  ;;  %v1778_v19 = vsel %vm1762_vm6, 1, %v3315_v9  ;;  %vm4298_vm0 = vcmask 1043459  }
 0x2e3   :  { %vm1763_vm1 = vmor %vm1647_vm9, %vm3971_vm12  ;;  %1805 = vperm.xlu0 %3211, %v1778_v19   ;;  %vm4295_vm12 = vcmask 1041409  }
 0x2e4   :  { %vm1748_vm13 = vmand %vm1664_vm8, %vm1740_vm14  ;;  %v1779_v1 = vsel %vm1763_vm1, 1, %v3315_v9  ;;  %vm4296_vm1 = vcmask 1042434   ;;  %vm4302_vm8 = vcmask 1045509  }
 0x2e5   :  { %vm1772_vm5 = vmor %vm1656_vm11, %vm1756_vm7  ;;  %1832 = vperm.xlu1 %3205, %v1787_v29   ;;  %vm4304_vm11 = vcmask 1046534  }
 0x2e6   :  { %vm1764_vm4 = vmor %vm1648_vm2, %vm1748_vm13  ;;  %v1788_v26 = vsel %vm1772_vm5, 1, %v3315_v9  ;;  %vm4306_vm2 = vcmask 1047559  }
 0x2e7   :  { %1808 = vperm.xlu0 %3211, %v1779_v1   ;;  %v1780_v33 = vsel %vm1764_vm4, 1, %v3315_v9  ;;  %vm4297_vm10 = vmmov %vm4295_vm12 }
 0x2e8   :  { %vm4299_vm14 = vmmov %vm4296_vm1 }
 0x2e9   :  { %1835 = vperm.xlu1 %3205, %v1788_v26   ;;  %vm4301_vm9 = vmmov %vm4298_vm0 }
 0x2ea   :  { %vm4303_vm6 = vmmov %vm4300_vm15 }
 0x2eb   :  { %1811 = vperm.xlu0 %3211, %v1780_v33   ;;  %vm4305_vm7 = vmmov %vm4302_vm8 }
 0x2ec   :  { %vm4307_vm13 = vmmov %vm4304_vm11 }
 0x2ed   :  { %vm4309_vm5 = vmmov %vm4306_vm2 }
 0x2ee   :  { %vm4310_vm4 = vmmov %vm4308_vm3 }
 0x349   :  { %v1794_v31 = vpop.permute.xlu1 %1793 }
 0x34a   :  { %v1844_v9 = vrot.slane %v1794_v31, %v3507_v63 }
 0x34b   :  { %v1791_v12 = vpop.permute.xlu0 %1790 }
 0x34c   :  { %v1840_v52 = vrot.slane %v1791_v12, %v3507_v63 }
 0x34e   :  { %v1818_v62 = vpop.permute.xlu1 %1817  ;;  %v1901_v7 = vsel %vm4297_vm10, %v1844_v9, %v1840_v52 }
 0x34f   :  { %v1876_v47 = vrot.slane %v1818_v62, %v3507_v63 }
 0x350   :  { %v1815_v34 = vpop.permute.xlu0 %1814 }
 0x351   :  { %v1872_v48 = vrot.slane %v1815_v34, %v3507_v63 }
 0x352   :  { %v1821_v0 = vpop.permute.xlu1 %1820 }
 0x353   :  { %v1880_v11 = vrot.slane %v1821_v0, %v3507_v63  ;;  %v1908_v57 = vsel %vm4295_vm12, %v1876_v47, %v1872_v48 }
 0x354   :  { %v1797_v43 = vpop.permute.xlu0 %1796 }
 0x355   :  { %v1848_v54 = vrot.slane %v1797_v43, %v3507_v63  ;;  %v1909_v58 = vsel %vm4296_vm1, %v1880_v11, %v1908_v57 }
 0x356   :  { %v1824_v45 = vpop.permute.xlu1 %1823 }
 0x357   :  { %v1884_v53 = vrot.slane %v1824_v45, %v3507_v63  ;;  %v1902_v13 = vsel %vm4299_vm14, %v1848_v54, %v1901_v7  ;;  %v1952_v7 = vrot.slane %v3369_v17, %v3450_v42 }
 0x359   :  { %v1910_v20 = vsel %vm4298_vm0, %v1884_v53, %v1909_v58  ;;  %v1944_v58 = vrot.slane %v3369_v17, %v3388_v24  ;;  %vm4311_vm0 = vnez %v4284_v30 }
 0x35a   :  { %v1800_v28 = vpop.permute.xlu0 %1799 }
 0x35b   :  { %v1852_v59 = vrot.slane %v1800_v28, %v3507_v63 }
 0x35c   :  { %v1827_v8 = vpop.permute.xlu1 %1826 }
 0x35d   :  { %v1888_v55 = vrot.slane %v1827_v8, %v3507_v63  ;;  %v1903_v26 = vsel %vm4301_vm9, %v1852_v59, %v1902_v13 }
 0x35e   :  { %v1803_v38 = vpop.permute.xlu0 %1802 }
 0x35f   :  { %v1856_v2 = vrot.slane %v1803_v38, %v3507_v63  ;;  %v1911_v19 = vsel %vm4300_vm15, %v1888_v55, %v1910_v20  ;;  %v1956_v20 = vrot.slane %v3369_v17, %v3434_v39  ;;  %v1960_v39 = vrot.slane %v3369_v17, %v3440_v41 }
 0x360   :  { %v1830_v40 = vpop.permute.xlu1 %1829 }
 0x361   :  { %v1892_v60 = vrot.slane %v1830_v40, %v3507_v63  ;;  %v1904_v12 = vsel %vm4303_vm6, %v1856_v2, %v1903_v26 }
 0x362   :  { %v1806_v50 = vpop.permute.xlu0 %1805 }
 0x363   :  { %v1860_v27 = vrot.slane %v1806_v50, %v3507_v63  ;;  %v1912_v33 = vsel %vm4302_vm8, %v1892_v60, %v1911_v19 }
 0x364   :  { %v1833_v56 = vpop.permute.xlu1 %1832 }
 0x365   :  { %v1896_v61 = vrot.slane %v1833_v56, %v3507_v63  ;;  %v1905_v0 = vsel %vm4305_vm7, %v1860_v27, %v1904_v12  ;;  %v1964_v12 = vrot.slane %v3369_v17, %v3461_v46 }
 0x366   :  { %v1809_v3 = vpop.permute.xlu0 %1808 }
 0x367   :  { %v1864_v29 = vrot.slane %v1809_v3, %v3507_v63  ;;  %v1913_v62 = vsel %vm4304_vm11, %v1896_v61, %v1912_v33  ;;  %v1948_v3 = vrot.slane %v3369_v17, %v3415_v36 }
 0x368   :  { %v1836_v1 = vpop.permute.xlu1 %1835 }
 0x369   :  { %v1900_v31 = vrot.slane %v1836_v1, %v3507_v63  ;;  %v1906_v28 = vsel %vm4307_vm13, %v1864_v29, %v1905_v0 }
 0x36a   :  { %v1812_v34 = vpop.permute.xlu0 %1811 }
 0x36b   :  { %v1868_v43 = vrot.slane %v1812_v34, %v3507_v63  ;;  %v1914_v45 = vsel %vm4306_vm2, %v1900_v31, %v1913_v62  ;;  %vm4314_vm2 = vnez %v4286_v32  ;;  %v1968_v34 = vrot.slane %v3369_v17, %v3455_v44 }
 0x36c   :  { %v1928_v8 = vsel %vm4308_vm3, %v1914_v45, 0  ;;  %v1972_v45 = vrot.slane %v3369_v17, %v3475_v49 }
 0x36d   :  { %v1930_v38 = vshrl.u32 %v1928_v8, 16  ;;  %v1907_v40 = vsel %vm4309_vm5, %v1868_v43, %v1906_v28  ;;  %v1929_v53 = vand.u32 65535, %v1928_v8 }
 0x36e   :  { %v1915_v47 = vsel %vm4310_vm4, %v1907_v40, 0 }
 0x36f   :  { %v1932_v48 = vcvt.s32.f32 %v1930_v38  ;;  %v1917_v11 = vshrl.u32 %v1915_v47, 16  ;;  %v1916_v9 = vand.u32 65535, %v1915_v47  ;;  %v1931_v54 = vcvt.s32.f32 %v1929_v53 }
 0x371   :  { %1935 = vadd.xlane.f32.xlu1 %v1932_v48  ;;  %v1919_v50 = vcvt.s32.f32 %v1917_v11  ;;  %v1918_v52 = vcvt.s32.f32 %v1916_v9 }
 0x373   :  { %1922 = vadd.xlane.f32.xlu0 %v1919_v50 }
 0x377   :  { %1920 = vadd.xlane.f32.xlu0 %v1918_v52 }
 0x37b   :  { %1933 = vadd.xlane.f32.xlu0 %v1931_v54 }
 0x3fe   :  { %v1936_v56 = vpop.xlane.xlu1 %1935 }
 0x3ff   :  { %v1938_v59 = vcvt.f32.s32 %v1936_v56  ;;  %v3157_v56 = vsel %vm4311_vm0, 1.0, %v3316_v51 }
 0x400   :  { %v1923_v55 = vpop.xlane.xlu0 %1922 }
 0x401   :  { %v1925_v57 = vcvt.f32.s32 %v1923_v55  ;;  %v1939_v13 = vshll.u32 %v1938_v59, 16  ;;  %v3112_v59 = vrot.slane %v3157_v56, %v3507_v63 }
 0x403   :  { %v1926_v2 = vshll.u32 %v1925_v57, 16  ;;  %v3158_v57 = vsel %vm4314_vm2, 1.0, %v3316_v51 }
 0x404   :  { %v1921_v60 = vpop.xlane.xlu0 %1920 }
 0x405   :  { %v1924_v61 = vcvt.f32.s32 %v1921_v60  ;;  %v3116_v60 = vrot.slane %v3158_v57, %v3507_v63 }
 0x407   :  { %v1927_v27 = vadd.s32 %v1926_v2, %v1924_v61 }
 0x408   :  { %v1934_v19 = vpop.xlane.xlu0 %1933 }
 0x409   :  { %v1937_v29 = vcvt.f32.s32 %v1934_v19  ;;  %vm1973_vm12 = vcmp.eq.s32.totalorder %v1927_v27, %v1944_v58  ;;  %vm1974_vm1 = vcmp.eq.s32.totalorder %v1927_v27, %v1948_v3  ;;  %vm1975_vm10 = vcmp.eq.s32.totalorder %v1927_v27, %v1952_v7 }
 0x40a   :  { %vm1993_vm14 = vmand %vm1973_vm12, %vm4311_vm0  ;;  %vm1976_vm15 = vcmp.eq.s32.totalorder %v1927_v27, %v1956_v20  ;;  %vm1977_vm12 = vcmp.eq.s32.totalorder %v1927_v27, %v1960_v39 }
 0x40b   :  { %v1940_v1 = vadd.s32 %v1939_v13, %v1937_v29  ;;  %vm1994_vm9 = vmand %vm1974_vm1, %vm4311_vm0  ;;  %v2009_v42 = vsel %vm1993_vm14, 1.0, %v3316_v51 }
 0x40c   :  { %v2010_v26 = vsel %vm1994_vm9, 1.0, %v3316_v51  ;;  %vm1995_vm8 = vmand %vm1975_vm10, %vm4311_vm0 }
 0x40d   :  { %v3247_v33 = vpack.i.bf16 %v2010_v26, %v2009_v42  ;;  %vm1983_vm6 = vcmp.eq.s32.totalorder %v1940_v1, %v1952_v7  ;;  %vm1981_vm11 = vcmp.eq.s32.totalorder %v1940_v1, %v1944_v58  ;;  %vm4076_vm7 = vmand %vm1976_vm15, %vm4311_vm0  ;;  %vm1982_vm3 = vcmp.eq.s32.totalorder %v1940_v1, %v1948_v3 }
 0x40e   :  { %vm2003_vm13 = vmand %vm1983_vm6, %vm4314_vm2  ;;  %vm1984_vm5 = vcmp.eq.s32.totalorder %v1940_v1, %v1956_v20  ;;  %v2011_v41 = vsel %vm1995_vm8, 1.0, %v3316_v51  ;;  %vm1985_vm10 = vcmp.eq.s32.totalorder %v1940_v1, %v1960_v39  ;;  %vm1978_vm15 = vcmp.eq.s32.totalorder %v1927_v27, %v1964_v12 }
 0x40f   :  { %3248 = vperm.xlu1 %3205, %v3247_v33   ;;  %v2019_v62 = vsel %vm2003_vm13, 1.0, %v3316_v51  ;;  %vm2001_vm4 = vmand %vm1981_vm11, %vm4314_vm2  ;;  %vm1986_vm8 = vcmp.eq.s32.totalorder %v1940_v1, %v1964_v12  ;;  %vm1979_vm11 = vcmp.eq.s32.totalorder %v1927_v27, %v1968_v34  ;;  %v2012_v44 = vsel %vm4076_vm7, 1.0, %v3316_v51 }
 0x410   :  { %v3257_v0 = vpack.i.bf16 %v2019_v62, %v2011_v41  ;;  %vm2002_vm1 = vmand %vm1982_vm3, %vm4314_vm2  ;;  %v2017_v46 = vsel %vm2001_vm4, 1.0, %v3316_v51  ;;  %vm1987_vm3 = vcmp.eq.s32.totalorder %v1940_v1, %v1968_v34  ;;  %vm1980_vm4 = vcmp.eq.s32.totalorder %v1927_v27, %v1972_v45 }
 0x411   :  { %v2018_v43 = vsel %vm2002_vm1, 1.0, %v3316_v51  ;;  %vm2004_vm14 = vmand %vm1984_vm5, %vm4314_vm2  ;;  %vm1988_vm7 = vcmp.eq.s32.totalorder %v1940_v1, %v1972_v45 }
 0x412   :  { %v3252_v28 = vpack.i.bf16 %v2018_v43, %v2017_v46  ;;  %v2020_v8 = vsel %vm2004_vm14, 1.0, %v3316_v51  ;;  %vm1997_vm9 = vmand %vm1977_vm12, %vm4311_vm0 }
 0x413   :  { %3258 = vperm.xlu1 %3205, %v3257_v0   ;;  %vm2005_vm6 = vmand %vm1985_vm10, %vm4314_vm2  ;;  %v3262_v17 = vpack.i.bf16 %v2020_v8, %v2012_v44  ;;  %v2013_v49 = vsel %vm1997_vm9, 1.0, %v3316_v51  ;;  %vm3119_vm9 = vcmask 58368  }
 0x414   :  { %3253 = vperm.xlu0 %3211, %v3252_v28   ;;  %v2021_v38 = vsel %vm2005_vm6, 1.0, %v3316_v51  ;;  %vm1998_vm13 = vmand %vm1978_vm15, %vm4311_vm0  ;;  %vm4315_vm15 = vcmask 1041409  }
 0x415   :  { %vm2006_vm5 = vmand %vm1986_vm8, %vm4314_vm2  ;;  %v3267_v40 = vpack.i.bf16 %v2021_v38, %v2013_v49  ;;  %v2014_v48 = vsel %vm1998_vm13, 1.0, %v3316_v51  ;;  %v3117_v58 = vsel %vm4315_vm15, %v3116_v60, %v3112_v59  ;;  %vm4318_vm8 = vcmask 1042434  }
 0x416   :  { %v2022_v47 = vsel %vm2006_vm5, 1.0, %v3316_v51  ;;  %vm1999_vm12 = vmand %vm1979_vm11, %vm4311_vm0  ;;  %v3120_v2 = vsel %vm3119_vm9, %v3117_v58, 0.0  ;;  %vm4320_vm11 = vcmask 1043459  }
 0x417   :  { %3263 = vperm.xlu1 %3205, %v3262_v17   ;;  %vm2007_vm1 = vmand %vm1987_vm3, %vm4314_vm2  ;;  %v3272_v50 = vpack.i.bf16 %v2022_v47, %v2014_v48  ;;  %v2015_v9 = vsel %vm1999_vm12, 1.0, %v3316_v51  ;;  %vm4322_vm3 = vcmask 1044484  }
 0x418   :  { %3268 = vperm.xlu0 %3211, %v3267_v40   ;;  %v2023_v11 = vsel %vm2007_vm1, 1.0, %v3316_v51  ;;  %vm2000_vm10 = vmand %vm1980_vm4, %vm4311_vm0  ;;  %vm4324_vm4 = vcmask 1045509  }
 0x419   :  { %vm2008_vm14 = vmand %vm1988_vm7, %vm4314_vm2  ;;  %v3277_v52 = vpack.i.bf16 %v2023_v11, %v2015_v9  ;;  %v2016_v54 = vsel %vm2000_vm10, 1.0, %v3316_v51  ;;  %vm4326_vm7 = vcmask 1046534   ;;  %vm4328_vm10 = vcmask 1047559  }
 0x41a   :  { %v2024_v53 = vsel %vm2008_vm14, 1.0, %v3316_v51  ;;  %vm4316_vm0 = vmmov %vm4315_vm15  ;;  %vm4330_vm15 = vcmask 64512  }
 0x41b   :  { %3273 = vperm.xlu1 %3205, %v3272_v50   ;;  %v3282_v55 = vpack.i.bf16 %v2024_v53, %v2016_v54  ;;  %vm4317_vm2 = vmmov %vm4316_vm0 }
 0x41c   :  { %3278 = vperm.xlu0 %3211, %v3277_v52   ;;  %vm4319_vm6 = vmmov %vm4318_vm8 }
 0x41d   :  { %vm4321_vm13 = vmmov %vm4320_vm11 }
 0x41e   :  { %vm4323_vm5 = vmmov %vm4322_vm3 }
 0x41f   :  { %3283 = vperm.xlu1 %3205, %v3282_v55   ;;  %vm4325_vm12 = vmmov %vm4324_vm4 }
 0x420   :  { %vm4327_vm1 = vmmov %vm4326_vm7 }
 0x421   :  { %vm4329_vm14 = vmmov %vm4328_vm10 }
 0x422   :  { %vm4331_vm9 = vmmov %vm4330_vm15 }
 0x43b   :  { %3121 = vadd.xlane.f32.xlu0 %v3120_v2 }
 0x48e   :  { %v3249_v61 = vpop.permute.xlu1 %3248 }
 0x48f   :  { %v3251_v3 = vunpack.i.h.bf16 %v3249_v61  ;;  %v3250_v7 = vunpack.i.l.bf16 %v3249_v61 }
 0x491   :  { %v2064_v32 = vrot.slane %v3251_v3, %v3507_v63  ;;  %v2060_v1 = vrot.slane %v3250_v7, %v3507_v63 }
 0x492   :  { %v3259_v20 = vpop.permute.xlu1 %3258 }
 0x493   :  { %v3261_v27 = vunpack.i.h.bf16 %v3259_v20  ;;  %v3260_v30 = vunpack.i.l.bf16 %v3259_v20  ;;  %v3254_v13 = vpop.permute.xlu0 %3253  ;;  %v2089_v43 = vsel %vm4317_vm2, %v2064_v32, %v2060_v1 }
 0x494   :  { %v3256_v19 = vunpack.i.h.bf16 %v3254_v13  ;;  %v3255_v29 = vunpack.i.l.bf16 %v3254_v13 }
 0x495   :  { %v2606_v42 = vrot.slane %v3261_v27, %v3507_v63  ;;  %v2068_v39 = vrot.slane %v3260_v30, %v3507_v63 }
 0x496   :  { %v2602_v26 = vrot.slane %v3256_v19, %v3507_v63  ;;  %v2598_v33 = vrot.slane %v3255_v29, %v3507_v63  ;;  %v3264_v31 = vpop.permute.xlu1 %3263 }
 0x497   :  { %v3266_v12 = vunpack.i.h.bf16 %v3264_v31  ;;  %v3265_v41 = vunpack.i.l.bf16 %v3264_v31  ;;  %v3269_v62 = vpop.permute.xlu0 %3268  ;;  %v2090_v8 = vsel %vm4318_vm8, %v2068_v39, %v2089_v43 }
 0x498   :  { %v2627_v34 = vsel %vm4316_vm0, %v2602_v26, %v2598_v33  ;;  %v3271_v0 = vunpack.i.h.bf16 %v3269_v62  ;;  %v3270_v46 = vunpack.i.l.bf16 %v3269_v62  ;;  %vm3134_vm0 = vcmask 0  }
 0x499   :  { %v2610_v45 = vrot.slane %v3266_v12, %v3507_v63  ;;  %v2072_v28 = vrot.slane %v3265_v41, %v3507_v63  ;;  %v2628_v44 = vsel %vm4319_vm6, %v2606_v42, %v2627_v34 }
 0x49a   :  { %v2614_v38 = vrot.slane %v3271_v0, %v3507_v63  ;;  %v2076_v17 = vrot.slane %v3270_v46, %v3507_v63  ;;  %v3274_v49 = vpop.permute.xlu1 %3273 }
 0x49b   :  { %v2091_v40 = vsel %vm4320_vm11, %v2072_v28, %v2090_v8  ;;  %v2629_v47 = vsel %vm4321_vm13, %v2610_v45, %v2628_v44  ;;  %v3276_v48 = vunpack.i.h.bf16 %v3274_v49  ;;  %v3275_v11 = vunpack.i.l.bf16 %v3274_v49  ;;  %v3279_v50 = vpop.permute.xlu0 %3278 }
 0x49c   :  { %v3281_v9 = vunpack.i.h.bf16 %v3279_v50  ;;  %v3280_v52 = vunpack.i.l.bf16 %v3279_v50  ;;  %v2092_v55 = vsel %vm4322_vm3, %v2076_v17, %v2091_v40  ;;  %v2630_v56 = vsel %vm4323_vm5, %v2614_v38, %v2629_v47 }
 0x49d   :  { %v2618_v53 = vrot.slane %v3276_v48, %v3507_v63  ;;  %v2080_v54 = vrot.slane %v3275_v11, %v3507_v63 }
 0x49e   :  { %v2622_v57 = vrot.slane %v3281_v9, %v3507_v63  ;;  %v2084_v59 = vrot.slane %v3280_v52, %v3507_v63  ;;  %v3284_v60 = vpop.permute.xlu1 %3283 }
 0x49f   :  { %v2093_v58 = vsel %vm4324_vm4, %v2080_v54, %v2092_v55  ;;  %v2631_v2 = vsel %vm4325_vm12, %v2618_v53, %v2630_v56  ;;  %v3286_v61 = vunpack.i.h.bf16 %v3284_v60  ;;  %v3285_v3 = vunpack.i.l.bf16 %v3284_v60 }
 0x4a0   :  { %v2094_v27 = vsel %vm4326_vm7, %v2084_v59, %v2093_v58  ;;  %v2632_v30 = vsel %vm4327_vm1, %v2622_v57, %v2631_v2 }
 0x4a1   :  { %v2626_v7 = vrot.slane %v3286_v61, %v3507_v63  ;;  %v2088_v20 = vrot.slane %v3285_v3, %v3507_v63 }
 0x4a3   :  { %v2095_v13 = vsel %vm4328_vm10, %v2088_v20, %v2094_v27  ;;  %v2633_v19 = vsel %vm4329_vm14, %v2626_v7, %v2632_v30 }
 0x4a4   :  { %v2096_v29 = vsel %vm4330_vm15, %v2095_v13, 0  ;;  %v2634_v32 = vsel %vm4331_vm9, %v2633_v19, 0 }
 0x4a5   :  { %v2165_v1 = vand.u32 4294901760, %v2096_v29  ;;  %v2703_v42 = vand.u32 4294901760, %v2634_v32 }
 0x4a7   :  { %v2166_v39 = vsub.f32 %v2096_v29, %v2165_v1  ;;  %v2704_v26 = vsub.f32 %v2634_v32, %v2703_v42 }
 0x4a9   :  { %v2167_v33 = vand.u32 4294901760, %v2166_v39  ;;  %v2705_v31 = vand.u32 4294901760, %v2704_v26 }
 0x4ab   :  { %v2168_v12 = vsub.f32 %v2166_v39, %v2167_v33  ;;  %v2706_v63 = vsub.f32 %v2704_v26, %v2705_v31 }
 0x4ad   :  { %v2169_v41 = vand.u32 4294901760, %v2168_v12  ;;  %v2707_v62 = vand.u32 4294901760, %v2706_v63 }
 0x4af   :  { %2170 = vmatmul.mubr.f32.vlgmr.msra.gmra.mrb[2].mxu0 %v2169_v41  ;;  %2708 = vmatmul.mubr.f32.vlgmr.msra.gmra.mrb[2].mxu1 %v2707_v62 }
 0x4b0   :  { %2187 = vmatpush1.msra.mxu0 %v3412_v35  ;;  %2725 = vmatpush1.msra.mxu1 %v3417_v37 }
 0x4b1   :  { %2250 = vmatprep.mubr.f32.mxu0 %v3316_v51  ;;  %2260 = vmatprep.subr.mxu0 %v3361_v14 }
 0x4b2   :  { %2788 = vmatprep.mubr.f32.mxu1 %v3316_v51  ;;  %2798 = vmatprep.subr.mxu1 %v3364_v15 }
 0x4b7   :  { %2252 = vmatmul.mubr.f32.vlgmr.msra.gmra.mrb[2].mxu0 %v2165_v1  ;;  %2790 = vmatmul.mubr.f32.vlgmr.msra.gmra.mrb[2].mxu1 %v2703_v42 }
 0x4b8   :  { %2263 = vmatpush1.msra.mxu0 %v3367_v16  ;;  %2801 = vmatpush1.msra.mxu1 %v3374_v18 }
 0x4b9   :  { %2326 = vmatprep.mubr.f32.mxu0 %v3316_v51  ;;  %2336 = vmatprep.subr.mxu0 %v3345_v4 }
 0x4ba   :  { %2864 = vmatprep.mubr.f32.mxu1 %v3316_v51  ;;  %2874 = vmatprep.subr.mxu1 %v3349_v6 }
 0x4bf   :  { %2329 = vmatmul.mubr.f32.vlgmr.msra.gmra.mrb[2].mxu0 %v2166_v39  ;;  %2867 = vmatmul.mubr.f32.vlgmr.msra.gmra.mrb[2].mxu1 %v2704_v26 }
 0x4c0   :  { %2338 = vmatpush1.msra.mxu0 %v3347_v5  ;;  %2876 = vmatpush1.msra.mxu1 %v3356_v10 }
 0x4c1   :  { %2401 = vmatprep.mubr.f32.mxu0 %v3316_v51  ;;  %2414 = vmatprep.subr.mxu0 %v3379_v21 }
 0x4c2   :  { %2939 = vmatprep.mubr.f32.mxu1 %v3316_v51  ;;  %2952 = vmatprep.subr.mxu1 %v3382_v22 }
 0x4c7   :  { %2405 = vmatmul.mubr.f32.vlgmr.msra.gmra.mrb[2].mxu0 %v2167_v33  ;;  %2943 = vmatmul.mubr.f32.vlgmr.msra.gmra.mrb[2].mxu1 %v2705_v31 }
 0x4c8   :  { %v3122_v14 = vpop.xlane.xlu0 %3121  ;;  %2418 = vmatpush1.msra.mxu0 %v3385_v23  ;;  %2956 = vmatpush1.msra.mxu1 %v3391_v25 }
 0x4c9   :  { %v3127_v15 = vrot.slane %v3122_v14, %v3388_v24  ;;  %v3131_v16 = vrot.slane %v3122_v14, %v3415_v36  ;;  %2481 = vmatprep.mubr.f32.mxu0 %v3316_v51  ;;  %2490 = vmatprep.subr.mxu0 %v3345_v4 }
 0x4ca   :  { %3019 = vmatprep.mubr.f32.mxu1 %v3316_v51  ;;  %3028 = vmatprep.subr.mxu1 %v3349_v6 }
 0x4cb   :  { %3135 = vst.msk [vmem:[%s4217_s2] sm:$0x1] %vm3134_vm0, %v3127_v15  ;;  %3136 = vst.msk [vmem:[%s4217_s2 + $0x1] sm:$0x1] %vm3134_vm0, %v3131_v16  ;;  %s3291_s2 = scalar_lea.vmem %s3143_s21, 512 }
 0x4cc   :  { %p3292_p0 = scmp.ne.s32.totalorder %s3143_s21, %s3291_s2  ;;  %p3297_p2 = scmp.lt.s32.totalorder %s3291_s2, %s3291_s2 }
 0x4ce   :  { %p3298_p3 = por %p3297_p2, %p3296_p1 }
 0x4cf   :  { %2483 = vmatmul.mubr.f32.vlgmr.msra.gmra.mrb[2].mxu0 %v2165_v1  ;;  %3021 = vmatmul.mubr.f32.vlgmr.msra.gmra.mrb[2].mxu1 %v2703_v42 }
 0x4d0   :  { %2492 = vmatpush1.msra.mxu0 %v3347_v5  ;;  %3030 = vmatpush1.msra.mxu1 %v3356_v10  ;;  %p3299_p4 = pnand %p3298_p3, %p3292_p0 }
 0x4d1   :  { %2555 = vmatprep.mubr.f32.mxu0 %v3316_v51  ;;  %3093 = vmatprep.mubr.f32.mxu1 %v3316_v51 }
 0x4d7   :  { %2557 = vmatmul.mubr.f32.vlgmr.msra.gmra.mrb[2].mxu0 %v2165_v1  ;;  %3095 = vmatmul.mubr.f32.vlgmr.msra.gmra.mrb[2].mxu1 %v2703_v42 }
 0x5aa   :  { %v2558_v4 = vpop.f32.mrb[2].mxu0  ;;  %v3096_v6 = vpop.f32.mrb[2].mxu1 }
 0x5ab   :  { %3101 = vst [vmem:[#allocation2] sm:$0xff] %v2558_v4  ;;  %3103 = vst [vmem:[#allocation2 + $0x10] sm:$0xff] %v3096_v6  ;;  %v2560_v18 = vpop.f32.mrb[3].mxu0  ;;  %v3098_v21 = vpop.f32.mrb[3].mxu1 }
 0x5ac   :  { %3102 = vst [vmem:[#allocation2 + $0x8] sm:$0xff] %v2560_v18  ;;  %3104 = vst [vmem:[#allocation2 + $0x18] sm:$0xff] %v3098_v21 }
 0x5ad   :  { %3302 = shalt.err (!%p3299_p4)
}
 0x5ae   :  { %s3303_s24 = scalar_lea.hbm %s4216_s1, 512 }
 0x5af   :  { %p3304_p5 = scmp.ne.s32.totalorder %s4216_s1, %s3303_s24  ;;  %p3307_p6 = scmp.lt.u32.totalorder %s3303_s24, %s4216_s1 }
 0x5b1   :  { %p3309_p7 = pnand %p3307_p6, %p3304_p5 }
 0x5b3   :  { %3312 = shalt.err (!%p3309_p7)
}
 0x5b4   :  { %s3319_s29 = smov 256   ;;  %s3320_s30 = smov 16  }
 0x5b5   :  { %3148 = dma.vmem_to_hbm [thread:$0]  %s3143_s21, 512, %s4216_s1, [#allocation3], %s3319_s29, %s3319_s29, %s3320_s30  }
 0x5b6   :  { %3313 = dma.done.wait [#allocation3], 512  }
 0x5b7   :  { %3314 = vsyncadd [#allocation3], 4294966784 }
 0x5b8   :  { %3156 = vsyncpa [#allocation3], 1 }

</bundles_post_ra>
